<compile_context>
chip_gen: v6e
topology: v6e:2x2x1
jax: 0.10.0
libtpu: 0.0.40
codegen_flags: <defaults>
</compile_context>

<pallas_src>
import math
import jax
import jax.numpy as jnp
from jax.experimental import pallas as pl
from jax.experimental.pallas import tpu as pltpu

# ---- toy config (ModelArgs analogue, Llama-style branch) ----
B, S, D = 2, 8, 128           # batch, seq, hidden (D = 128 -> lane-dense activations/stores)
N_HEAD, N_KV = 4, 2           # n_head, n_local_heads (GQA)
HD = D // N_HEAD              # head_dim
D_KV = N_KV * HD
INTER = 256                   # intermediate_size
EPS = 1e-5                    # norm_eps
ROPE_BASE = 10000.0
SCALE = 1.0 / math.sqrt(HD)   # default SDPA scale


def transformer_block_kernel(
    x_ref, cos_ref, sine_ref, sino_ref,
    wq_ref, wk_ref, wv_ref, wo_ref, w1_ref, w3_ref, w2_ref,
    ln1_ref, ln2_ref,
    o_ref,
):
    f32, bf16 = jnp.float32, jnp.bfloat16
    x = x_ref[...]                                           # (S, D) f32 — one batch per grid step

    # ---- input RMSNorm (f32 elementwise) ----
    var = jnp.mean(x * x, axis=-1, keepdims=True)
    xn = x * jax.lax.rsqrt(var + EPS) * ln1_ref[...]
    xn_bf = xn.astype(bf16)

    # ---- q/k/v projections: bf16 on the MXU, f32 accumulate ----
    q = jnp.dot(xn_bf, wq_ref[...], preferred_element_type=f32)     # (S, D)
    k = jnp.dot(xn_bf, wk_ref[...], preferred_element_type=f32)     # (S, D_KV)
    v = jnp.dot(xn_bf, wv_ref[...], preferred_element_type=f32)     # (S, D_KV)
    # softmax scale applied once here (one (S,D) multiply) instead of per-head on S^2 scores;
    # in production fold it into wq at weight-load time (literally free).
    q = q * SCALE

    # ---- interleaved RoPE via XLU roll + zero-masked sin tables (exact; HD is even, so every
    # wrapped / cross-head lane is multiplied by a zero sin entry) ----
    cos_h, se_h, so_h = cos_ref[...], sine_ref[...], sino_ref[...]   # (S, HD), position-only
    cos_q = jnp.tile(cos_h, (1, N_HEAD))                             # broadcast across heads once
    se_q = jnp.tile(se_h, (1, N_HEAD))
    so_q = jnp.tile(so_h, (1, N_HEAD))
    cos_k = jnp.tile(cos_h, (1, N_KV))
    se_k = jnp.tile(se_h, (1, N_KV))
    so_k = jnp.tile(so_h, (1, N_KV))
    # roll(width-1) == "next element" (shift-left), roll(1) == "previous element" (shift-right)
    q = q * cos_q + pltpu.roll(q, D - 1, 1) * se_q + pltpu.roll(q, 1, 1) * so_q
    k = k * cos_k + pltpu.roll(k, D_KV - 1, 1) * se_k + pltpu.roll(k, 1, 1) * so_k

    # ---- GQA attention: single batched contraction over a head-major (H, S, HD) view ----
    n_rep = N_HEAD // N_KV
    qH = pltpu.einshape("shd->hsd", q.reshape(S, N_HEAD, HD))        # (H, S, HD) f32
    kG = pltpu.einshape("shd->hsd", k.reshape(S, N_KV, HD))          # (G, S, HD) f32
    vG = pltpu.einshape("shd->hsd", v.reshape(S, N_KV, HD))
    kH = jnp.broadcast_to(kG[:, None], (N_KV, n_rep, S, HD)).reshape(N_HEAD, S, HD)
    vH = jnp.broadcast_to(vG[:, None], (N_KV, n_rep, S, HD)).reshape(N_HEAD, S, HD)

    # causal mask generated in-kernel (no O(S^2) HBM input)
    row = jax.lax.broadcasted_iota(jnp.int32, (S, S), 0)
    col = jax.lax.broadcasted_iota(jnp.int32, (S, S), 1)
    mask = jnp.where(row >= col, 0.0, -1e9)                          # (S, S) f32

    s = jnp.einsum("hqd,hkd->hqk", qH.astype(bf16), kH.astype(bf16),
                   preferred_element_type=f32) + mask[None]          # (H, S, S) f32
    m = jnp.max(s, axis=-1, keepdims=True)
    p = jnp.exp(s - m)
    p = p * pl.reciprocal(jnp.sum(p, axis=-1, keepdims=True), approx=True)
    att = jnp.einsum("hqk,hkd->hqd", p.astype(bf16), vH.astype(bf16),
                     preferred_element_type=f32)                     # (H, S, HD) f32
    att = pltpu.einshape("hsd->shd", att).reshape(S, D)              # (S, D) f32

    # ---- output projection + residual ----
    y = jnp.dot(att.astype(bf16), wo_ref[...], preferred_element_type=f32)
    h_res = x + y

    # ---- post-attention RMSNorm + SwiGLU FFN + residual ----
    var2 = jnp.mean(h_res * h_res, axis=-1, keepdims=True)
    hn_bf = (h_res * jax.lax.rsqrt(var2 + EPS) * ln2_ref[...]).astype(bf16)
    gate = jnp.dot(hn_bf, w1_ref[...], preferred_element_type=f32)
    up = jnp.dot(hn_bf, w3_ref[...], preferred_element_type=f32)
    act = gate * jax.nn.sigmoid(gate)                                # SiLU in f32
    ff = jnp.dot((act * up).astype(bf16), w2_ref[...], preferred_element_type=f32)

    o_ref[...] = h_res + ff                                          # lane-dense (S, 128) f32 store


def transformer_block_pallas(x, cos_h, sin_e_h, sin_o_h, weights):
    wq, wk, wv, wo, w1, w3, w2, ln1, ln2 = weights

    def full(shape):  # whole-array block, invariant across the batch grid axis
        return pl.BlockSpec(shape, lambda b, _n=len(shape): (0,) * _n)

    return pl.pallas_call(
        transformer_block_kernel,
        out_shape=jax.ShapeDtypeStruct((B, S, D), jnp.float32),
        grid=(B,),
        in_specs=[
            pl.BlockSpec((None, S, D), lambda b: (b, 0, 0)),   # x: one batch row-block per step
            full((S, HD)), full((S, HD)), full((S, HD)),       # head-width rotary tables
            full((D, D)), full((D, D_KV)), full((D, D_KV)), full((D, D)),
            full((D, INTER)), full((D, INTER)), full((INTER, D)),
            full((1, D)), full((1, D)),
        ],
        out_specs=pl.BlockSpec((None, S, D), lambda b: (b, 0, 0)),
        compiler_params=pltpu.CompilerParams(
            dimension_semantics=("parallel",)),                # batch axis -> both TCs on v7x
    )(x, cos_h, sin_e_h, sin_o_h, wq, wk, wv, wo, w1, w3, w2, ln1, ln2)


# ---------------------------------------------------------------------------
# Pure-JAX reference mirroring the PyTorch forward (Llama branch), using the same
# bf16-operand / f32-accumulate matmul precision as the kernel for a tight check.
# ---------------------------------------------------------------------------
def reference_block(x, freqs_cis, mask_ss, weights):
    wq, wk, wv, wo, w1, w3, w2, ln1, ln2 = weights
    f32, bf16 = jnp.float32, jnp.bfloat16

    def mm(a, b):
        return jnp.dot(a.astype(bf16), b.astype(bf16), preferred_element_type=f32)

    def rms(z, w):
        var = jnp.mean(z * z, axis=-1, keepdims=True)
        return z * jax.lax.rsqrt(var + EPS) * w[0]

    def rot(t, fc):                                          # apply_rotary_emb (interleaved)
        ts = t.reshape(*t.shape[:-1], -1, 2)
        fc = fc.reshape(1, ts.shape[1], 1, ts.shape[3], 2)
        o0 = ts[..., 0] * fc[..., 0] - ts[..., 1] * fc[..., 1]
        o1 = ts[..., 1] * fc[..., 0] + ts[..., 0] * fc[..., 1]
        return jnp.stack([o0, o1], -1).reshape(t.shape)

    xn = rms(x, ln1)
    q = mm(xn, wq).reshape(B, S, N_HEAD, HD)
    k = mm(xn, wk).reshape(B, S, N_KV, HD)
    v = mm(xn, wv).reshape(B, S, N_KV, HD)
    q, k = rot(q, freqs_cis), rot(k, freqs_cis)
    q, k, v = (t.transpose(0, 2, 1, 3) for t in (q, k, v))
    k = jnp.repeat(k, N_HEAD // N_KV, axis=1)
    v = jnp.repeat(v, N_HEAD // N_KV, axis=1)
    s = jnp.einsum('bhqd,bhkd->bhqk', q.astype(bf16), k.astype(bf16),
                   preferred_element_type=f32) * SCALE + mask_ss[None, None]
    p = jax.nn.softmax(s, axis=-1)
    y = jnp.einsum('bhqk,bhkd->bhqd', p.astype(bf16), v.astype(bf16),
                   preferred_element_type=f32)
    y = y.transpose(0, 2, 1, 3).reshape(B, S, D)
    h = x + mm(y, wo)
    hn = rms(h, ln2)
    ff = mm(jax.nn.silu(mm(hn, w1)) * mm(hn, w3), w2)
    return h + ff


if __name__ == "__main__":
    key = jax.random.PRNGKey(0)
    kx, *kw = jax.random.split(key, 8)

    def lin(k, fan_in, fan_out):
        w = jax.random.normal(k, (fan_in, fan_out), jnp.float32) / math.sqrt(fan_in)
        return w.astype(jnp.bfloat16)                        # weights stored bf16 (MXU-native)

    wq = lin(kw[0], D, D)
    wk = lin(kw[1], D, D_KV)
    wv = lin(kw[2], D, D_KV)
    wo = lin(kw[3], D, D)
    w1 = lin(kw[4], D, INTER)
    w3 = lin(kw[5], D, INTER)
    w2 = lin(kw[6], INTER, D)
    ln1 = jnp.ones((1, D), jnp.float32)                      # RMSNorm weights init to ones
    ln2 = jnp.ones((1, D), jnp.float32)
    weights = (wq, wk, wv, wo, w1, w3, w2, ln1, ln2)

    # head-width rotary tables (position-dependent only; broadcast across heads in-kernel)
    pos = jnp.arange(S, dtype=jnp.float32)
    inv_freq = 1.0 / (ROPE_BASE ** (jnp.arange(0, HD, 2, dtype=jnp.float32) / HD))
    ang = pos[:, None] * inv_freq[None, :]                   # (S, HD//2)
    cos_b, sin_b = jnp.cos(ang), jnp.sin(ang)
    freqs_cis = jnp.stack([cos_b, sin_b], axis=-1)           # (S, HD//2, 2) for the reference

    cos_h = jnp.repeat(cos_b, 2, axis=-1)                    # (S, HD)
    sin_i = jnp.repeat(sin_b, 2, axis=-1)                    # (S, HD)
    even = (jnp.arange(HD) % 2) == 0
    sin_e_h = jnp.where(even, -sin_i, 0.0)                   # pairs with roll(width-1) ("next")
    sin_o_h = jnp.where(even, 0.0, sin_i)                    # pairs with roll(1)       ("prev")

    # reference causal mask (kernel builds its own mask in-kernel with iota)
    mask_ss = jnp.where(jnp.tril(jnp.ones((S, S), bool)), 0.0, -1e9).astype(jnp.float32)

    x = jax.random.normal(kx, (B, S, D), jnp.float32)

    out = transformer_block_pallas(x, cos_h, sin_e_h, sin_o_h, weights)
    out = jax.block_until_ready(out)

    ref = reference_block(x, freqs_cis, mask_ss, weights)
    err = jnp.max(jnp.abs(out - ref))
    assert jnp.allclose(out, ref, atol=2e-2, rtol=2e-2), f"max abs err {err}"

    print("KERNEL_OK")
</pallas_src>

<mosaic_0001>
module attributes {stable_mosaic.version = 11 : i64} {
  func.func @transformer_block_kernel(%arg0: i32, %arg1: memref<1x8x128xf32, #tpu.memory_space<vmem>>, %arg2: memref<8x32xf32, #tpu.memory_space<vmem>>, %arg3: memref<8x32xf32, #tpu.memory_space<vmem>>, %arg4: memref<8x32xf32, #tpu.memory_space<vmem>>, %arg5: memref<128x128xbf16, #tpu.memory_space<vmem>>, %arg6: memref<128x64xbf16, #tpu.memory_space<vmem>>, %arg7: memref<128x64xbf16, #tpu.memory_space<vmem>>, %arg8: memref<128x128xbf16, #tpu.memory_space<vmem>>, %arg9: memref<128x256xbf16, #tpu.memory_space<vmem>>, %arg10: memref<128x256xbf16, #tpu.memory_space<vmem>>, %arg11: memref<256x128xbf16, #tpu.memory_space<vmem>>, %arg12: memref<1x128xf32, #tpu.memory_space<vmem>>, %arg13: memref<1x128xf32, #tpu.memory_space<vmem>>, %arg14: memref<1x8x128xf32, #tpu.memory_space<vmem>>) attributes {dimension_semantics = [#tpu.dimension_semantics<parallel>], iteration_bounds = array<i64: 2>, scalar_prefetch = 0 : i64, scratch_operands = 0 : i64, tpu.core_type = #tpu.core_type<tc>, window_params = [{transform_indices = @transform_0, window_bounds = array<i64: 1, 8, 128>}, {pipeline_mode = #tpu.pipeline_mode<synchronous>, transform_indices = @transform_1, window_bounds = array<i64: 8, 32>}, {pipeline_mode = #tpu.pipeline_mode<synchronous>, transform_indices = @transform_2, window_bounds = array<i64: 8, 32>}, {pipeline_mode = #tpu.pipeline_mode<synchronous>, transform_indices = @transform_3, window_bounds = array<i64: 8, 32>}, {pipeline_mode = #tpu.pipeline_mode<synchronous>, transform_indices = @transform_4, window_bounds = array<i64: 128, 128>}, {pipeline_mode = #tpu.pipeline_mode<synchronous>, transform_indices = @transform_5, window_bounds = array<i64: 128, 64>}, {pipeline_mode = #tpu.pipeline_mode<synchronous>, transform_indices = @transform_6, window_bounds = array<i64: 128, 64>}, {pipeline_mode = #tpu.pipeline_mode<synchronous>, transform_indices = @transform_7, window_bounds = array<i64: 128, 128>}, {pipeline_mode = #tpu.pipeline_mode<synchronous>, transform_indices = @transform_8, window_bounds = array<i64: 128, 256>}, {pipeline_mode = #tpu.pipeline_mode<synchronous>, transform_indices = @transform_9, window_bounds = array<i64: 128, 256>}, {pipeline_mode = #tpu.pipeline_mode<synchronous>, transform_indices = @transform_10, window_bounds = array<i64: 256, 128>}, {pipeline_mode = #tpu.pipeline_mode<synchronous>, transform_indices = @transform_11, window_bounds = array<i64: 1, 128>}, {pipeline_mode = #tpu.pipeline_mode<synchronous>, transform_indices = @transform_12, window_bounds = array<i64: 1, 128>}, {transform_indices = @transform_13, window_bounds = array<i64: 1, 8, 128>}]} {
    %c0 = arith.constant 0 : index
    %c0_0 = arith.constant 0 : index
    %c0_1 = arith.constant 0 : index
    %0 = vector.load %arg1[%c0, %c0_0, %c0_1] : memref<1x8x128xf32, #tpu.memory_space<vmem>>, vector<1x8x128xf32>
    %1 = vector.shape_cast %0 : vector<1x8x128xf32> to vector<8x128xf32>
    %2 = arith.mulf %1, %1 : vector<8x128xf32>
    %cst = arith.constant dense<0.000000e+00> : vector<8xf32>
    %3 = vector.multi_reduction <add>, %2, %cst [1] : vector<8x128xf32> to vector<8xf32>
    %4 = vector.shape_cast %3 : vector<8xf32> to vector<8x1xf32>
    %cst_2 = arith.constant 1.280000e+02 : f32
    %5 = vector.broadcast %cst_2 : f32 to vector<8x1xf32>
    %6 = arith.divf %4, %5 : vector<8x1xf32>
    %cst_3 = arith.constant 9.99999974E-6 : f32
    %7 = vector.broadcast %cst_3 : f32 to vector<8x1xf32>
    %8 = arith.addf %6, %7 : vector<8x1xf32>
    %9 = math.rsqrt %8 : vector<8x1xf32>
    %10 = vector.broadcast %9 : vector<8x1xf32> to vector<8x128xf32>
    %11 = arith.mulf %1, %10 : vector<8x128xf32>
    %c0_4 = arith.constant 0 : index
    %c0_5 = arith.constant 0 : index
    %12 = vector.load %arg12[%c0_4, %c0_5] : memref<1x128xf32, #tpu.memory_space<vmem>>, vector<1x128xf32>
    %13 = vector.broadcast %12 : vector<1x128xf32> to vector<8x128xf32>
    %14 = arith.mulf %11, %13 : vector<8x128xf32>
    %15 = arith.truncf %14 : vector<8x128xf32> to vector<8x128xbf16>
    %c0_6 = arith.constant 0 : index
    %c0_7 = arith.constant 0 : index
    %16 = vector.load %arg5[%c0_6, %c0_7] : memref<128x128xbf16, #tpu.memory_space<vmem>>, vector<128x128xbf16>
    %cst_8 = arith.constant dense<0.000000e+00> : vector<8x128xf32>
    %17 = tpu.matmul %15, %16, %cst_8 {dimension_numbers = #tpu.dot_dimension_numbers<[1], [0], [0], [1], [0, 0, 1, 1], [], []>} : vector<8x128xbf16>, vector<128x128xbf16>, vector<8x128xf32> -> vector<8x128xf32>
    %c0_9 = arith.constant 0 : index
    %c0_10 = arith.constant 0 : index
    %18 = vector.load %arg6[%c0_9, %c0_10] : memref<128x64xbf16, #tpu.memory_space<vmem>>, vector<128x64xbf16>
    %cst_11 = arith.constant dense<0.000000e+00> : vector<8x64xf32>
    %19 = tpu.matmul %15, %18, %cst_11 {dimension_numbers = #tpu.dot_dimension_numbers<[1], [0], [0], [1], [0, 0, 1, 1], [], []>} : vector<8x128xbf16>, vector<128x64xbf16>, vector<8x64xf32> -> vector<8x64xf32>
    %c0_12 = arith.constant 0 : index
    %c0_13 = arith.constant 0 : index
    %20 = vector.load %arg7[%c0_12, %c0_13] : memref<128x64xbf16, #tpu.memory_space<vmem>>, vector<128x64xbf16>
    %cst_14 = arith.constant dense<0.000000e+00> : vector<8x64xf32>
    %21 = tpu.matmul %15, %20, %cst_14 {dimension_numbers = #tpu.dot_dimension_numbers<[1], [0], [0], [1], [0, 0, 1, 1], [], []>} : vector<8x128xbf16>, vector<128x64xbf16>, vector<8x64xf32> -> vector<8x64xf32>
    %cst_15 = arith.constant 0.176776692 : f32
    %22 = vector.broadcast %cst_15 : f32 to vector<8x128xf32>
    %23 = arith.mulf %17, %22 : vector<8x128xf32>
    %c0_16 = arith.constant 0 : index
    %c0_17 = arith.constant 0 : index
    %24 = vector.load %arg2[%c0_16, %c0_17] : memref<8x32xf32, #tpu.memory_space<vmem>>, vector<8x32xf32>
    %c0_18 = arith.constant 0 : index
    %c0_19 = arith.constant 0 : index
    %25 = vector.load %arg3[%c0_18, %c0_19] : memref<8x32xf32, #tpu.memory_space<vmem>>, vector<8x32xf32>
    %c0_20 = arith.constant 0 : index
    %c0_21 = arith.constant 0 : index
    %26 = vector.load %arg4[%c0_20, %c0_21] : memref<8x32xf32, #tpu.memory_space<vmem>>, vector<8x32xf32>
    %27 = tpu.concatenate %24, %24, %24, %24 in 1 : vector<8x32xf32>, vector<8x32xf32>, vector<8x32xf32>, vector<8x32xf32> -> vector<8x128xf32>
    %28 = tpu.concatenate %25, %25, %25, %25 in 1 : vector<8x32xf32>, vector<8x32xf32>, vector<8x32xf32>, vector<8x32xf32> -> vector<8x128xf32>
    %29 = tpu.concatenate %26, %26, %26, %26 in 1 : vector<8x32xf32>, vector<8x32xf32>, vector<8x32xf32>, vector<8x32xf32> -> vector<8x128xf32>
    %30 = tpu.concatenate %24, %24 in 1 : vector<8x32xf32>, vector<8x32xf32> -> vector<8x64xf32>
    %31 = tpu.concatenate %25, %25 in 1 : vector<8x32xf32>, vector<8x32xf32> -> vector<8x64xf32>
    %32 = tpu.concatenate %26, %26 in 1 : vector<8x32xf32>, vector<8x32xf32> -> vector<8x64xf32>
    %33 = arith.mulf %23, %27 : vector<8x128xf32>
    %c127_i32 = arith.constant 127 : i32
    %34 = tpu.dynamic_rotate %23 by %c127_i32 dim 1 : vector<8x128xf32>, i32 -> vector<8x128xf32>
    %35 = arith.mulf %34, %28 : vector<8x128xf32>
    %36 = arith.addf %33, %35 : vector<8x128xf32>
    %c1_i32 = arith.constant 1 : i32
    %37 = tpu.dynamic_rotate %23 by %c1_i32 dim 1 : vector<8x128xf32>, i32 -> vector<8x128xf32>
    %38 = arith.mulf %37, %29 : vector<8x128xf32>
    %39 = arith.addf %36, %38 : vector<8x128xf32>
    %40 = arith.mulf %19, %30 : vector<8x64xf32>
    %c63_i32 = arith.constant 63 : i32
    %41 = tpu.dynamic_rotate %19 by %c63_i32 dim 1 : vector<8x64xf32>, i32 -> vector<8x64xf32>
    %42 = arith.mulf %41, %31 : vector<8x64xf32>
    %43 = arith.addf %40, %42 : vector<8x64xf32>
    %c1_i32_22 = arith.constant 1 : i32
    %44 = tpu.dynamic_rotate %19 by %c1_i32_22 dim 1 : vector<8x64xf32>, i32 -> vector<8x64xf32>
    %45 = arith.mulf %44, %32 : vector<8x64xf32>
    %46 = arith.addf %43, %45 : vector<8x64xf32>
    %47 = vector.shape_cast %39 : vector<8x128xf32> to vector<8x4x32xf32>
    %48 = tpu.transpose %47, [1, 0, 2] : vector<8x4x32xf32> -> vector<4x8x32xf32>
    %49 = vector.shape_cast %46 : vector<8x64xf32> to vector<8x2x32xf32>
    %50 = tpu.transpose %49, [1, 0, 2] : vector<8x2x32xf32> -> vector<2x8x32xf32>
    %51 = vector.shape_cast %21 : vector<8x64xf32> to vector<8x2x32xf32>
    %52 = tpu.transpose %51, [1, 0, 2] : vector<8x2x32xf32> -> vector<2x8x32xf32>
    %53 = vector.shape_cast %50 : vector<2x8x32xf32> to vector<2x1x8x32xf32>
    %54 = vector.shape_cast %53 : vector<2x1x8x32xf32> to vector<2x1x8x32xf32>
    %55 = vector.broadcast %54 : vector<2x1x8x32xf32> to vector<2x2x8x32xf32>
    %56 = vector.shape_cast %55 : vector<2x2x8x32xf32> to vector<4x8x32xf32>
    %57 = vector.shape_cast %52 : vector<2x8x32xf32> to vector<2x1x8x32xf32>
    %58 = vector.shape_cast %57 : vector<2x1x8x32xf32> to vector<2x1x8x32xf32>
    %59 = vector.broadcast %58 : vector<2x1x8x32xf32> to vector<2x2x8x32xf32>
    %60 = vector.shape_cast %59 : vector<2x2x8x32xf32> to vector<4x8x32xf32>
    %61 = tpu.iota {dimensions = array<i32: 0>} : vector<8x8xi32>
    %62 = tpu.iota {dimensions = array<i32: 1>} : vector<8x8xi32>
    %63 = arith.cmpi sge, %61, %62 : vector<8x8xi32>
    %cst_23 = arith.constant 0.000000e+00 : f32
    %cst_24 = arith.constant -1.000000e+09 : f32
    %64 = vector.broadcast %cst_23 : f32 to vector<8x8xf32>
    %65 = vector.broadcast %cst_24 : f32 to vector<8x8xf32>
    %66 = arith.select %63, %64, %65 : vector<8x8xi1>, vector<8x8xf32>
    %67 = arith.truncf %48 : vector<4x8x32xf32> to vector<4x8x32xbf16>
    %68 = arith.truncf %56 : vector<4x8x32xf32> to vector<4x8x32xbf16>
    "tpu.trace_start"() <{level = 10 : i32, message = "hqd,hkd->hqk"}> : () -> ()
    %cst_25 = arith.constant dense<0.000000e+00> : vector<4x8x8xf32>
    %69 = tpu.matmul %67, %68, %cst_25 {dimension_numbers = #tpu.dot_dimension_numbers<[2], [2], [1], [1], [0, 0, 0, 1, 1, 1], [0], [0]>} : vector<4x8x32xbf16>, vector<4x8x32xbf16>, vector<4x8x8xf32> -> vector<4x8x8xf32>
    "tpu.trace_stop"() : () -> ()
    %70 = vector.shape_cast %66 : vector<8x8xf32> to vector<1x8x8xf32>
    %71 = vector.broadcast %70 : vector<1x8x8xf32> to vector<4x8x8xf32>
    %72 = arith.addf %69, %71 : vector<4x8x8xf32>
    %cst_26 = arith.constant dense<0xFF800000> : vector<4x8xf32>
    %73 = vector.multi_reduction <maximumf>, %72, %cst_26 [2] : vector<4x8x8xf32> to vector<4x8xf32>
    %74 = vector.shape_cast %73 : vector<4x8xf32> to vector<4x8x1xf32>
    %75 = vector.broadcast %74 : vector<4x8x1xf32> to vector<4x8x8xf32>
    %76 = arith.subf %72, %75 : vector<4x8x8xf32>
    %77 = math.exp %76 : vector<4x8x8xf32>
    %cst_27 = arith.constant dense<0.000000e+00> : vector<4x8xf32>
    %78 = vector.multi_reduction <add>, %77, %cst_27 [2] : vector<4x8x8xf32> to vector<4x8xf32>
    %79 = vector.shape_cast %78 : vector<4x8xf32> to vector<4x8x1xf32>
    %80 = tpu.reciprocal %79 {approx = true} : vector<4x8x1xf32> -> vector<4x8x1xf32>
    %81 = vector.broadcast %80 : vector<4x8x1xf32> to vector<4x8x8xf32>
    %82 = arith.mulf %77, %81 : vector<4x8x8xf32>
    %83 = arith.truncf %82 : vector<4x8x8xf32> to vector<4x8x8xbf16>
    %84 = arith.truncf %60 : vector<4x8x32xf32> to vector<4x8x32xbf16>
    "tpu.trace_start"() <{level = 10 : i32, message = "hqk,hkd->hqd"}> : () -> ()
    %cst_28 = arith.constant dense<0.000000e+00> : vector<4x8x32xf32>
    %85 = tpu.matmul %83, %84, %cst_28 {dimension_numbers = #tpu.dot_dimension_numbers<[2], [1], [1], [2], [0, 0, 0, 1, 1, 2], [0], [0]>} : vector<4x8x8xbf16>, vector<4x8x32xbf16>, vector<4x8x32xf32> -> vector<4x8x32xf32>
    "tpu.trace_stop"() : () -> ()
    %86 = tpu.transpose %85, [1, 0, 2] : vector<4x8x32xf32> -> vector<8x4x32xf32>
    %87 = vector.shape_cast %86 : vector<8x4x32xf32> to vector<8x128xf32>
    %88 = arith.truncf %87 : vector<8x128xf32> to vector<8x128xbf16>
    %c0_29 = arith.constant 0 : index
    %c0_30 = arith.constant 0 : index
    %89 = vector.load %arg8[%c0_29, %c0_30] : memref<128x128xbf16, #tpu.memory_space<vmem>>, vector<128x128xbf16>
    %cst_31 = arith.constant dense<0.000000e+00> : vector<8x128xf32>
    %90 = tpu.matmul %88, %89, %cst_31 {dimension_numbers = #tpu.dot_dimension_numbers<[1], [0], [0], [1], [0, 0, 1, 1], [], []>} : vector<8x128xbf16>, vector<128x128xbf16>, vector<8x128xf32> -> vector<8x128xf32>
    %91 = arith.addf %1, %90 : vector<8x128xf32>
    %92 = arith.mulf %91, %91 : vector<8x128xf32>
    %cst_32 = arith.constant dense<0.000000e+00> : vector<8xf32>
    %93 = vector.multi_reduction <add>, %92, %cst_32 [1] : vector<8x128xf32> to vector<8xf32>
    %94 = vector.shape_cast %93 : vector<8xf32> to vector<8x1xf32>
    %cst_33 = arith.constant 1.280000e+02 : f32
    %95 = vector.broadcast %cst_33 : f32 to vector<8x1xf32>
    %96 = arith.divf %94, %95 : vector<8x1xf32>
    %cst_34 = arith.constant 9.99999974E-6 : f32
    %97 = vector.broadcast %cst_34 : f32 to vector<8x1xf32>
    %98 = arith.addf %96, %97 : vector<8x1xf32>
    %99 = math.rsqrt %98 : vector<8x1xf32>
    %100 = vector.broadcast %99 : vector<8x1xf32> to vector<8x128xf32>
    %101 = arith.mulf %91, %100 : vector<8x128xf32>
    %c0_35 = arith.constant 0 : index
    %c0_36 = arith.constant 0 : index
    %102 = vector.load %arg13[%c0_35, %c0_36] : memref<1x128xf32, #tpu.memory_space<vmem>>, vector<1x128xf32>
    %103 = vector.broadcast %102 : vector<1x128xf32> to vector<8x128xf32>
    %104 = arith.mulf %101, %103 : vector<8x128xf32>
    %105 = arith.truncf %104 : vector<8x128xf32> to vector<8x128xbf16>
    %c0_37 = arith.constant 0 : index
    %c0_38 = arith.constant 0 : index
    %106 = vector.load %arg9[%c0_37, %c0_38] : memref<128x256xbf16, #tpu.memory_space<vmem>>, vector<128x256xbf16>
    %cst_39 = arith.constant dense<0.000000e+00> : vector<8x256xf32>
    %107 = tpu.matmul %105, %106, %cst_39 {dimension_numbers = #tpu.dot_dimension_numbers<[1], [0], [0], [1], [0, 0, 1, 1], [], []>} : vector<8x128xbf16>, vector<128x256xbf16>, vector<8x256xf32> -> vector<8x256xf32>
    %c0_40 = arith.constant 0 : index
    %c0_41 = arith.constant 0 : index
    %108 = vector.load %arg10[%c0_40, %c0_41] : memref<128x256xbf16, #tpu.memory_space<vmem>>, vector<128x256xbf16>
    %cst_42 = arith.constant dense<0.000000e+00> : vector<8x256xf32>
    %109 = tpu.matmul %105, %108, %cst_42 {dimension_numbers = #tpu.dot_dimension_numbers<[1], [0], [0], [1], [0, 0, 1, 1], [], []>} : vector<8x128xbf16>, vector<128x256xbf16>, vector<8x256xf32> -> vector<8x256xf32>
    %110 = arith.negf %107 : vector<8x256xf32>
    %111 = math.exp %110 : vector<8x256xf32>
    %cst_43 = arith.constant 1.000000e+00 : f32
    %112 = vector.broadcast %cst_43 : f32 to vector<8x256xf32>
    %113 = arith.addf %112, %111 : vector<8x256xf32>
    %114 = arith.divf %112, %113 : vector<8x256xf32>
    %115 = arith.mulf %107, %114 : vector<8x256xf32>
    %116 = arith.mulf %115, %109 : vector<8x256xf32>
    %117 = arith.truncf %116 : vector<8x256xf32> to vector<8x256xbf16>
    %c0_44 = arith.constant 0 : index
    %c0_45 = arith.constant 0 : index
    %118 = vector.load %arg11[%c0_44, %c0_45] : memref<256x128xbf16, #tpu.memory_space<vmem>>, vector<256x128xbf16>
    %cst_46 = arith.constant dense<0.000000e+00> : vector<8x128xf32>
    %119 = tpu.matmul %117, %118, %cst_46 {dimension_numbers = #tpu.dot_dimension_numbers<[1], [0], [0], [1], [0, 0, 1, 1], [], []>} : vector<8x256xbf16>, vector<256x128xbf16>, vector<8x128xf32> -> vector<8x128xf32>
    %120 = arith.addf %91, %119 : vector<8x128xf32>
    %c0_47 = arith.constant 0 : index
    %c0_48 = arith.constant 0 : index
    %c0_49 = arith.constant 0 : index
    %121 = vector.load %arg14[%c0_47, %c0_48, %c0_49] : memref<1x8x128xf32, #tpu.memory_space<vmem>>, vector<1x8x128xf32>
    %122 = vector.shape_cast %121 : vector<1x8x128xf32> to vector<8x128xf32>
    %123 = vector.shape_cast %120 : vector<8x128xf32> to vector<1x8x128xf32>
    tpu.vector_store %arg14[%c0_47, %c0_48, %c0_49], %123 {strides = array<i32>} : memref<1x8x128xf32, #tpu.memory_space<vmem>>, vector<1x8x128xf32>,
    return
  }
  func.func @transform_0(%arg0: i32) -> (i32, i32, i32) {
    %c0_i32 = arith.constant 0 : i32
    %c0_i32_0 = arith.constant 0 : i32
    %c0_i32_1 = arith.constant 0 : i32
    return %arg0, %c0_i32, %c0_i32_0 : i32, i32, i32
  }
  func.func @transform_1(%arg0: i32) -> (i32, i32) {
    %c0_i32 = arith.constant 0 : i32
    %c0_i32_0 = arith.constant 0 : i32
    %c0_i32_1 = arith.constant 0 : i32
    return %c0_i32, %c0_i32_0 : i32, i32
  }
  func.func @transform_2(%arg0: i32) -> (i32, i32) {
    %c0_i32 = arith.constant 0 : i32
    %c0_i32_0 = arith.constant 0 : i32
    %c0_i32_1 = arith.constant 0 : i32
    return %c0_i32, %c0_i32_0 : i32, i32
  }
  func.func @transform_3(%arg0: i32) -> (i32, i32) {
    %c0_i32 = arith.constant 0 : i32
    %c0_i32_0 = arith.constant 0 : i32
    %c0_i32_1 = arith.constant 0 : i32
    return %c0_i32, %c0_i32_0 : i32, i32
  }
  func.func @transform_4(%arg0: i32) -> (i32, i32) {
    %c0_i32 = arith.constant 0 : i32
    %c0_i32_0 = arith.constant 0 : i32
    %c0_i32_1 = arith.constant 0 : i32
    return %c0_i32, %c0_i32_0 : i32, i32
  }
  func.func @transform_5(%arg0: i32) -> (i32, i32) {
    %c0_i32 = arith.constant 0 : i32
    %c0_i32_0 = arith.constant 0 : i32
    %c0_i32_1 = arith.constant 0 : i32
    return %c0_i32, %c0_i32_0 : i32, i32
  }
  func.func @transform_6(%arg0: i32) -> (i32, i32) {
    %c0_i32 = arith.constant 0 : i32
    %c0_i32_0 = arith.constant 0 : i32
    %c0_i32_1 = arith.constant 0 : i32
    return %c0_i32, %c0_i32_0 : i32, i32
  }
  func.func @transform_7(%arg0: i32) -> (i32, i32) {
    %c0_i32 = arith.constant 0 : i32
    %c0_i32_0 = arith.constant 0 : i32
    %c0_i32_1 = arith.constant 0 : i32
    return %c0_i32, %c0_i32_0 : i32, i32
  }
  func.func @transform_8(%arg0: i32) -> (i32, i32) {
    %c0_i32 = arith.constant 0 : i32
    %c0_i32_0 = arith.constant 0 : i32
    %c0_i32_1 = arith.constant 0 : i32
    return %c0_i32, %c0_i32_0 : i32, i32
  }
  func.func @transform_9(%arg0: i32) -> (i32, i32) {
    %c0_i32 = arith.constant 0 : i32
    %c0_i32_0 = arith.constant 0 : i32
    %c0_i32_1 = arith.constant 0 : i32
    return %c0_i32, %c0_i32_0 : i32, i32
  }
  func.func @transform_10(%arg0: i32) -> (i32, i32) {
    %c0_i32 = arith.constant 0 : i32
    %c0_i32_0 = arith.constant 0 : i32
    %c0_i32_1 = arith.constant 0 : i32
    return %c0_i32, %c0_i32_0 : i32, i32
  }
  func.func @transform_11(%arg0: i32) -> (i32, i32) {
    %c0_i32 = arith.constant 0 : i32
    %c0_i32_0 = arith.constant 0 : i32
    %c0_i32_1 = arith.constant 0 : i32
    return %c0_i32, %c0_i32_0 : i32, i32
  }
  func.func @transform_12(%arg0: i32) -> (i32, i32) {
    %c0_i32 = arith.constant 0 : i32
    %c0_i32_0 = arith.constant 0 : i32
    %c0_i32_1 = arith.constant 0 : i32
    return %c0_i32, %c0_i32_0 : i32, i32
  }
  func.func @transform_13(%arg0: i32) -> (i32, i32, i32) {
    %c0_i32 = arith.constant 0 : i32
    %c0_i32_0 = arith.constant 0 : i32
    %c0_i32_1 = arith.constant 0 : i32
    return %arg0, %c0_i32, %c0_i32_0 : i32, i32, i32
  }
}

</mosaic_0001>

<bundles_post_ra>
// kernel: tpu_custom_call.1
= control target key start
LH: loop header
LB: loop body
LE: loop exit
PB: predicated region body
PF: predicated region fallthrough
CT: control target
= control target key end

     0   :  { %s4082_s0 = inlined_call_operand.hbm [shape: f32[2,8,128], index: 0, kind: input, shape index: {}]   ;;  %s4083_s1 = inlined_call_operand.vmem [shape: f32[8,32], index: 1, kind: input, shape index: {}]   ;;  %s4084_s2 = inlined_call_operand.hbm [shape: f32[8,32], index: 2, kind: input, shape index: {}]   ;;  %s4085_s3 = inlined_call_operand.hbm [shape: f32[8,32], index: 3, kind: input, shape index: {}]   ;;  %s4086_s4 = inlined_call_operand.vmem [shape: bf16[128,128], index: 4, kind: input, shape index: {}]   ;;  %s4087_s5 = inlined_call_operand.vmem [shape: bf16[128,64], index: 5, kind: input, shape index: {}]   ;;  %s4088_s6 = inlined_call_operand.vmem [shape: bf16[128,64], index: 6, kind: input, shape index: {}]   ;;  %s4089_s7 = inlined_call_operand.hbm [shape: bf16[128,128], index: 7, kind: input, shape index: {}]   ;;  %s4090_s8 = inlined_call_operand.vmem [shape: bf16[128,256], index: 8, kind: input, shape index: {}]   ;;  %s4091_s9 = inlined_call_operand.hbm [shape: bf16[128,256], index: 9, kind: input, shape index: {}]   ;;  %s4092_s10 = inlined_call_operand.hbm [shape: bf16[256,128], index: 10, kind: input, shape index: {}]   ;;  %s4093_s11 = inlined_call_operand.vmem [shape: f32[1,128], index: 11, kind: input, shape index: {}]   ;;  %s4094_s12 = inlined_call_operand.vmem [shape: f32[1,128], index: 12, kind: input, shape index: {}]   ;;  %s4095_s13 = inlined_call_operand.hbm [shape: f32[2,8,128], index: 13, kind: output, shape index: {}]  }
   0x1   :  { %4105 = sst [smem:[#allocation22_spill]] %s4084_s2 }
   0x2   :  { %4106 = sst [smem:[#allocation23_spill]] %s4085_s3 }
   0x3   :  { %4107 = sst [smem:[#allocation24_spill]] %s4089_s7 }
   0x4   :  { %4108 = sst [smem:[#allocation25_spill]] %s4091_s9 }
   0x5   :  { %4109 = sst [smem:[#allocation26_spill]] %s4092_s10 }
   0x6   :  { %18 = vsyncpa [#allocation3], 0 }
   0x7   :  { %20 = vsyncpa [#allocation3 + $0x1], 0 }
   0x8   :  { %21 = vsyncpa [#allocation6], 0 }
   0x9   :  { %22 = vsyncpa [#allocation9], 0 }
   0xa   :  { %23 = vsyncpa [#allocation12], 0 }
   0xb   :  { %24 = vsyncpa [#allocation4], 0 }
   0xc   :  { %26 = vsyncpa [#allocation4 + $0x1], 0  ;;  %s3505_s25 = smov 0   ;;  %s3507_s26 = smov 0  }
   0xd   :  { %s3509_s27 = smov 0   ;;  %s3511_s28 = smov 0  }
   0xe LB: > { %4110 = sst [smem:[#allocation19_spill]] %s3405_s27  ;;  %s3411_s29 = smov [#allocation5]   ;;  %s3409_s28 = sphi %s3511_s28, %s4138_s28   ;;  %s3405_s27 = sphi %s3509_s27, %s4140_s27   ;;  %s3401_s26 = sphi %s3507_s26, %s4142_s26   ;;  %s3397_s25 = sphi %s3505_s25, %s4141_s25  }
   0xf   : > { %s357_s30 = sshll.u32 %s3411_s29, 4  ;;  %s3526_s14 = sadd.s32 4294967295, %s3409_s28   ;;  %s358_s30 = int_to_ptr.vmem [resolvable:$true] %s357_s30 }
  0x10   : > { %p2613_p0 = scmp.ge.s32.totalorder %s3409_s28, 1  ;;  %p4098_p1 = scmp.eq.s32.totalorder %s3526_s14, 0 }
  0x11   : > { %p341_p2 = scmp.lt.s32.totalorder %s3409_s28, 3  ;;  %s3412_s16 = smov [#allocation8]  }
  0x12   : > { %s387_s17 = sshll.u32 %s3412_s16, 4  ;;  %s3413_s19 = smov [#allocation7]   ;;  %s3538_s17 = int_to_ptr.vmem [resolvable:$true] %s387_s17 }
  0x13   : > { %p3531_p3 = pnand %p2613_p0, %p341_p2  ;;  %s368_s20 = sshll.u32 %s3413_s19, 4  ;;  %s3546_s20 = int_to_ptr.vmem [resolvable:$true] %s368_s20 }
  0x14   : > { %s3186_s22 = scalar_lea.vmem %s358_s30, 128  ;;  %p3194_p11 = scmp.lt.s32.totalorder %s358_s30, %s358_s30 }
  0x15   : > { %s4111_s15 = scalar_select %p3531_p3, 1, 0 }
  0x16   : > { %p2960_p5 = pneg %p3531_p3  ;;  %p3187_p8 = scmp.ne.s32.totalorder %s358_s30, %s3186_s22 }
  0x17   : > { %p3195_p12 = scmp.lt.s32.totalorder %s3186_s22, %s3186_s22 }
  0x18   : > { %p3542_p6 = pnand %p2960_p5, %p4098_p1 }
  0x19   : > { %p3196_p13 = por %p3195_p12, %p3194_p11 }
  0x1a   : > { %p3550_p7 = pneg %p3542_p6 }
  0x1c   : > { %p3189_p9 = pnand %p3187_p8, %p3550_p7 }
  0x1e   : > { %p3190_p10 = pneg %p3189_p9 }
  0x20   : > { %p3197_p0 = pnand %p3196_p13, %p3190_p10 }
  0x22   : > { %3200 = shalt.err (!%p3197_p0)
}
  0x23   : > { %s4114_s2 = sld [smem:[#allocation22_spill]]  ;;  %s3212_s29 = scalar_lea.vmem %s3538_s17, 1024 }
  0x24   : > { %p3213_p2 = scmp.ne.s32.totalorder %s3538_s17, %s3212_s29  ;;  %p3220_p9 = scmp.lt.s32.totalorder %s3538_s17, %s3538_s17 }
  0x25   : > { %p3221_p11 = scmp.lt.s32.totalorder %s3212_s29, %s3212_s29 }
  0x26   : > { %p3215_p5 = pnand %p3213_p2, %p3550_p7 }
  0x27   : > { %p3222_p10 = por %p3221_p11, %p3220_p9 }
  0x28   : > { %p3216_p8 = pneg %p3215_p5 }
  0x29   : > { %2963 = dma.hbm_to_vmem [thread:$0]  (!%p3542_p6), %s4114_s2, 128, %s358_s30, [#allocation6]  }
  0x2a   : > { %p3223_p12 = pnand %p3222_p10, %p3216_p8 }
  0x2c   : > { %3226 = shalt.err (!%p3223_p12)
}
  0x2d   : > { %s4096_s16 = smov 64   ;;  %s4097_s19 = smov 4  }
  0x2e   : > { %s4115_s7 = sld [smem:[#allocation24_spill]]  ;;  %s3238_s23 = scalar_lea.vmem %s3546_s20, 128 }
  0x2f   : > { %p3239_p13 = scmp.ne.s32.totalorder %s3546_s20, %s3238_s23  ;;  %p3246_p5 = scmp.lt.s32.totalorder %s3546_s20, %s3546_s20 }
  0x30   : > { %p3247_p8 = scmp.lt.s32.totalorder %s3238_s23, %s3238_s23 }
  0x31   : > { %p3241_p0 = pnand %p3239_p13, %p3550_p7 }
  0x32   : > { %p3248_p9 = por %p3247_p8, %p3246_p5 }
  0x33   : > { %p3242_p2 = pneg %p3241_p0 }
  0x34   : > { %2969 = dma.hbm_to_vmem [thread:$0]  (!%p3542_p6), %s4115_s7, 1024, %s3538_s17, [#allocation9], %s4096_s16, %s4096_s16, %s4097_s19  }
  0x35   : > { %p3249_p11 = pnand %p3248_p9, %p3242_p2 }
  0x37   : > { %3252 = shalt.err (!%p3249_p11)
}
  0x38   : > { %s4116_s3 = sld [smem:[#allocation23_spill]]  ;;  %s3416_s17 = smov [#allocation10]  }
  0x39   : > { %s403_s30 = sshll.u32 %s3416_s17, 4  ;;  %s404_s30 = int_to_ptr.vmem [resolvable:$true] %s403_s30 }
  0x3a   : > { %s3264_s22 = scalar_lea.vmem %s404_s30, 2048  ;;  %p3272_p0 = scmp.lt.s32.totalorder %s404_s30, %s404_s30 }
  0x3b   : > { %p3265_p10 = scmp.ne.s32.totalorder %s404_s30, %s3264_s22  ;;  %p3273_p5 = scmp.lt.s32.totalorder %s3264_s22, %s3264_s22 }
  0x3d   : > { %p3267_p12 = pnand %p3265_p10, %p3550_p7  ;;  %p3274_p2 = por %p3273_p5, %p3272_p0 }
  0x3e   : > { %2966 = dma.hbm_to_vmem [thread:$0]  (!%p3542_p6), %s4116_s3, 128, %s3546_s20, [#allocation6]  }
  0x3f   : > { %p3268_p13 = pneg %p3267_p12 }
  0x41   : > { %p3275_p8 = pnand %p3274_p2, %p3268_p13 }
  0x43   : > { %3278 = shalt.err (!%p3275_p8)
}
  0x44   : > { %s3417_s23 = smov 128   ;;  %s3418_s16 = smov 8  }
  0x45   : > { %s4117_s9 = sld [smem:[#allocation25_spill]]  ;;  %s3419_s29 = smov [#allocation11]  }
  0x46   : > { %s416_s17 = sshll.u32 %s3419_s29, 4  ;;  %s417_s17 = int_to_ptr.vmem [resolvable:$true] %s416_s17 }
  0x47   : > { %s3290_s19 = scalar_lea.vmem %s417_s17, 2048  ;;  %p3298_p12 = scmp.lt.s32.totalorder %s417_s17, %s417_s17 }
  0x48   : > { %p3291_p9 = scmp.ne.s32.totalorder %s417_s17, %s3290_s19  ;;  %p3299_p13 = scmp.lt.s32.totalorder %s3290_s19, %s3290_s19 }
  0x4a   : > { %p3293_p11 = pnand %p3291_p9, %p3550_p7  ;;  %p3300_p0 = por %p3299_p13, %p3298_p12 }
  0x4b   : > { %2972 = dma.hbm_to_vmem [thread:$0]  (!%p3542_p6), %s4117_s9, 2048, %s404_s30, [#allocation9], %s3417_s23, %s3417_s23, %s3418_s16  }
  0x4c   : > { %p3294_p10 = pneg %p3293_p11 }
  0x4e   : > { %p3301_p5 = pnand %p3300_p0, %p3294_p10 }
  0x50   : > { %3304 = shalt.err (!%p3301_p5)
}
  0x51   : > { %s4118_s22 = smov 4   ;;  %s4119_s2 = smov 64  }
  0x52   : > { %s4120_s10 = sld [smem:[#allocation26_spill]]  ;;  %s2612_s18 = sadd.s32 4294967294, %s3409_s28  }
  0x53   : > { %s3607_s21 = sadd.s32 1, %s3409_s28   ;;  %s39_s19 = sadd.s32 1, %s3405_s27 }
  0x54   : > { %4121 = sst [smem:[#allocation20_spill]] %s3607_s21  ;;  %s36_s30 = ssub.s32 %s3409_s28, %s3607_s21 }
  0x55   : > { %p46_p7 = scmp.ne.s32.totalorder %s3405_s27, %s3401_s26  ;;  %p37_p2 = scmp.eq.s32.totalorder %s36_s30, 0 }
  0x56   : > { %p47_p8 = scmp.eq.s32.totalorder %s3409_s28, 0  ;;  %p52_p9 = scmp.ne.s32.totalorder %s3401_s26, %s3397_s25 }
  0x57   : > { %p328_p11 = scmp.eq.s32.totalorder %s3526_s14, 1  ;;  %p334_p13 = scmp.eq.s32.totalorder %s2612_s18, 1 }
  0x58   : > { %2975 = dma.hbm_to_vmem [thread:$0]  (!%p3542_p6), %s4120_s10, 2048, %s417_s17, [#allocation12], %s4119_s2, %s4119_s2, %s4118_s22  }
  0x59   : > { %s3619_s23 = scalar_select %p37_p2, %s3405_s27, %s39_s19  }
  0x5a   : > { %p48_p10 = por %p47_p8, %p46_p7  ;;  %p3623_p12 = por %p4098_p1, %p52_p9 }
  0x5b   : > { %4122 = sst [smem:[#allocation21_spill]] %s3619_s23  ;;  %p3627_p6 = por %p328_p11, %p46_p7 }
  0x5c   : > { %s4123_s20 = scalar_select %p3623_p12, 1, 0 }
  0x5d   : > { %s4124_s2 = scalar_select %p3627_p6, 1, 0 }
  0x5e   : > { %p2989_p0 = scmp.lt.s32.totalorder %s3409_s28, 2  ;;  %s436_s29 = sand.u32 1, %s3405_s27  }
  0x5f   : > { %p3633_p5 = por %p334_p13, %p52_p9  ;;  %s2620_s22 = sshll.u32 %s436_s29, 3 }
  0x60   : > { %s2621_s24 = sshll.u32 %s3409_s28, 7  ;;  %s440_s3 = scalar_lea.vmem [#allocation2], %s2620_s22 }
  0x61   : > { %s4125_s17 = scalar_select %p3633_p5, 1, 0 }
  0x62   : > { %s3641_s30 = scalar_lea.hbm %s4082_s0, %s2621_s24  ;;  %s447_s7 = sshll.u32 %s440_s3, 4  ;;  %s448_s7 = int_to_ptr.vmem [resolvable:$true] %s447_s7 }
  0x63   : > { %p3643_p7 = pnand %p2989_p0, %p48_p10  ;;  %s437_s9 = scalar_lea.sflag [#allocation3], %s436_s29 }
  0x64   : > { %s3305_s10 = scalar_lea.hbm %s3641_s30, 128  ;;  %s3310_s19 = scalar_lea.hbm %s4082_s0, 256 }
  0x65   : > { %p3306_p2 = scmp.ne.s32.totalorder %s3641_s30, %s3305_s10  ;;  %p3307_p8 = pneg %p3643_p7 }
  0x66   : > { %p3311_p10 = scmp.lt.s32.totalorder %s3641_s30, %s4082_s0  ;;  %p3312_p13 = scmp.lt.s32.totalorder %s3310_s19, %s3305_s10 }
  0x67   : > { %p3308_p9 = pnand %p3307_p8, %p3306_p2 }
  0x68   : > { %p3313_p0 = por %p3312_p13, %p3311_p10 }
  0x69   : > { %p3309_p11 = pneg %p3308_p9 }
  0x6b   : > { %p3314_p4 = pnand %p3313_p0, %p3309_p11 }
  0x6d   : > { %3317 = shalt.err (!%p3314_p4)
}
  0x6e   : > { %s3318_s3 = scalar_lea.vmem %s448_s7, 128  ;;  %s3420_s29 = smov [#allocation2]  }
  0x6f   : > { %p3319_p1 = scmp.ne.s32.totalorder %s448_s7, %s3318_s3  ;;  %s3323_s27 = sshll.u32 %s3420_s29, 4  ;;  %s3324_s27 = int_to_ptr.vmem [resolvable:$false] %s3323_s27 }
  0x70   : > { %s3325_s21 = scalar_lea.vmem %s3324_s27, 256  ;;  %p3326_p2 = scmp.lt.s32.totalorder %s448_s7, %s3324_s27 }
  0x71   : > { %p3321_p5 = pnand %p3319_p1, %p3307_p8  ;;  %p3327_p9 = scmp.lt.s32.totalorder %s3325_s21, %s3318_s3 }
  0x73   : > { %p3322_p6 = pneg %p3321_p5  ;;  %p3328_p12 = por %p3327_p9, %p3326_p2 }
  0x75   : > { %p3329_p3 = pnand %p3328_p12, %p3322_p6 }
  0x77   : > { %3332 = shalt.err (!%p3329_p3)
}
  0x78   : > { %2979 = dma.hbm_to_vmem [thread:$0]  (!%p3643_p7), %s3641_s30, 128, %s448_s7, %s437_s9  }
  0x79   : > { %p4127_p11 = scmp.ne.s32.totalorder %s4111_s15, 0 }
  0x7a   : > { %s3664_s10 = sand.u32 (!%p4127_p11), 1, %s3401_s26   ;;  %p4128_p1 = scmp.ne.s32.totalorder (!%p4127_p11), %s4123_s20, 0 }
  0x7b   : > { %456 = sbr.rel (%p4127_p11) target bundleno = 2670 (0xa6e), region = 72  ;;  %s2623_s23 = sshll.u32 (!%p4127_p11), %s3664_s10, 3 }
  0x7c   : > { %s459_s27 = scalar_lea.sflag (!%p4127_p11), [#allocation3], %s3664_s10  ;;  %s3670_s21 = scalar_lea.vmem (!%p4127_p11), [#allocation2], %s2623_s23 }
  0x80   : > { %3376 = dma.done.wait (%p4128_p1), %s459_s27, 128  }
  0x81   : > { %3378 = vsyncadd (%p4128_p1), %s459_s27, 4294967168  ;;  %p4129_p3 = scmp.eq.s32.totalorder %s3526_s14, 0 }
  0x83   : > { %3380 = dma.done.wait (%p4129_p3), [#allocation6], 256   ;;  %p4130_p4 = pmov %p4129_p3 }
  0x84   : > { %p4131_p12 = pmov %p4129_p3 }
  0x85   : > { %3382 = vsyncadd (%p4130_p4), [#allocation6], 4294967040 }
  0x86   : > { %3384 = dma.done.wait (%p4131_p12), [#allocation9], 3072   ;;  %p4132_p6 = pmov %p4129_p3 }
  0x87   : > { %p4133_p5 = pmov %p4129_p3 }
  0x88   : > { %3386 = vsyncadd (%p4132_p6), [#allocation9], 4294964224 }
  0x89   : > { %3388 = dma.done.wait (%p4133_p5), [#allocation12], 2048   ;;  %p4134_p7 = pmov %p4129_p3 }
  0x8a   : > { %v3421_v0 = vmov 0.0   ;;  %v3691_v1 = vld [vmem:[%s3670_s21] sm:$0xff]  ;;  %v3050_v3 = vld [vmem:[%s4086_s4 + $0x38] sm:$0xff]   ;;  %v3052_v5 = vld [vmem:[%s4086_s4 + $0x30] sm:$0xff]   ;;  %vm3422_vm0 = vmmov 0   ;;  %s3423_s24 = smov 32  }
  0x8b   : > { %3390 = vsyncadd (%p4134_p7), [#allocation12], 4294965248  ;;  %2808 = vmatprep.subr.bf16.mxu0 %v3421_v0  ;;  %2828 = vmatprep.subr.bf16.mxu1 %v3421_v0  ;;  %v527_v2 = vmul.f32 %v3691_v1, %v3691_v1  ;;  %v3051_v4 = vld [vmem:[%s4087_s5 + $0x38] sm:$0xff]   ;;  %v3053_v6 = vld [vmem:[%s4087_s5 + $0x30] sm:$0xff]   ;;  %vm870_vm1 = vcmask 261120   ;;  %s3424_s7 = smov 1  }
  0x8c   : > { %2809 = vmatpush3.bf16.msra.mxu0 %v3050_v3  ;;  %2829 = vmatpush3.bf16.msra.mxu1 %v3051_v4  ;;  %v3054_v7 = vld [vmem:[%s4086_s4 + $0x28] sm:$0xff]   ;;  %v3056_v9 = vld [vmem:[%s4086_s4 + $0x20] sm:$0xff]   ;;  %v3058_v11 = vld [vmem:[%s4086_s4 + $0x18] sm:$0xff]   ;;  %s3425_s9 = smov 64   ;;  %s3426_s15 = smov 96   ;;  %vm912_vm2 = vcmask 1048064  }
  0x8d   : > { %528 = vadd.xlane.f32.xlu0 %v527_v2  ;;  %2810 = vmatprep.subr.bf16.mxu0 %v3421_v0  ;;  %v3055_v8 = vld [vmem:[%s4087_s5 + $0x28] sm:$0xff]   ;;  %v3057_v10 = vld [vmem:[%s4087_s5 + $0x20] sm:$0xff]   ;;  %v3059_v12 = vld [vmem:[%s4087_s5 + $0x18] sm:$0xff]   ;;  %s3427_s20 = smov 63   ;;  %s3428_s16 = smov 127   ;;  %vm872_vm3 = vcmask 523264  }
  0x8e   : > { %2830 = vmatprep.subr.bf16.mxu1 %v3421_v0  ;;  %v3060_v13 = vld [vmem:[%s4086_s4 + $0x10] sm:$0xff]   ;;  %2824 = vmatprep.mubr.msk.bf16.mxu0 %vm3422_vm0, %v3421_v0  ;;  %v3062_v15 = vld [vmem:[%s4086_s4 + $0x8] sm:$0xff]   ;;  %v3064_v17 = vld [vmem:[%s4086_s4] sm:$0xff]   ;;  %s3429_s19 = smov 65   ;;  %vm874_vm4 = vcmask 785408   ;;  %vm1515_vm6 = vcmask 64512  }
  0x8f   : > { %v3061_v14 = vld [vmem:[%s4087_s5 + $0x10] sm:$0xff]   ;;  %2844 = vmatprep.mubr.msk.bf16.mxu1 %vm3422_vm0, %v3421_v0  ;;  %v3063_v16 = vld [vmem:[%s4087_s5 + $0x8] sm:$0xff]   ;;  %v3065_v18 = vld [vmem:[%s4087_s5] sm:$0xff]   ;;  %vm1569_vm7 = vcmask 1043456   ;;  %p4135_p10 = scmp.ne.s32.totalorder %s4124_s2, 0 }
  0x90   : > { %2811 = vmatpush3.bf16.msra.mxu0 %v3052_v5  ;;  %2831 = vmatpush3.bf16.msra.mxu1 %v3053_v6  ;;  %v858_v19 = vld [vmem:[#allocation5] sm:$0xff]  ;;  %v2630_v24 = vld [vmem:[%s4093_s11] ss:$0 sm:$0xff]  ;;  %v3066_v27 = vld [vmem:[%s4088_s6 + $0x38] sm:$0xff]  }
  0x91   : > { %2812 = vmatprep.subr.bf16.mxu0 %v3421_v0  ;;  %2832 = vmatprep.subr.bf16.mxu1 %v3421_v0  ;;  %v3067_v29 = vld [vmem:[%s4088_s6 + $0x30] sm:$0xff]   ;;  %v3068_v30 = vld [vmem:[%s4088_s6 + $0x28] sm:$0xff]   ;;  %v3069_v31 = vld [vmem:[%s4088_s6 + $0x20] sm:$0xff]  }
  0x92   : > { %877 = vrot.lane.b32.xlu1 %v858_v19, %s3423_s24  ;;  %v3070_v32 = vld [vmem:[%s4088_s6 + $0x18] sm:$0xff]   ;;  %v3071_v33 = vld [vmem:[%s4088_s6 + $0x10] sm:$0xff]   ;;  %v3072_v34 = vld [vmem:[%s4088_s6 + $0x8] sm:$0xff]  }
  0x93   : > { %v3073_v35 = vld [vmem:[%s4088_s6] sm:$0xff]   ;;  %v859_v36 = vld [vmem:[#allocation7] sm:$0xff] }
  0x94   : > { %2813 = vmatpush3.bf16.msra.mxu0 %v3054_v7  ;;  %2833 = vmatpush3.bf16.msra.mxu1 %v3055_v8  ;;  %v857_v55 = vld [vmem:[%s4083_s1] sm:$0xff] }
  0x95   : > { %2814 = vmatprep.subr.bf16.mxu0 %v3421_v0  ;;  %2834 = vmatprep.subr.bf16.mxu1 %v3421_v0 }
  0x96   : > { %890 = vrot.lane.b32.xlu1 %v859_v36, %s3423_s24 }
  0x98   : > { %2815 = vmatpush3.bf16.msra.mxu0 %v3056_v9  ;;  %2835 = vmatpush3.bf16.msra.mxu1 %v3057_v10 }
  0x99   : > { %2816 = vmatprep.subr.bf16.mxu0 %v3421_v0  ;;  %2836 = vmatprep.subr.bf16.mxu1 %v3421_v0 }
  0x9c   : > { %2817 = vmatpush3.bf16.msra.mxu0 %v3058_v11  ;;  %2837 = vmatpush3.bf16.msra.mxu1 %v3059_v12 }
  0x9d   : > { %2818 = vmatprep.subr.bf16.mxu0 %v3421_v0  ;;  %2838 = vmatprep.subr.bf16.mxu1 %v3421_v0 }
  0xa0   : > { %2819 = vmatpush3.bf16.msra.mxu0 %v3060_v13  ;;  %2839 = vmatpush3.bf16.msra.mxu1 %v3061_v14 }
  0xa1   : > { %2820 = vmatprep.subr.bf16.mxu0 %v3421_v0  ;;  %2840 = vmatprep.subr.bf16.mxu1 %v3421_v0 }
  0xa4   : > { %2821 = vmatpush3.bf16.msra.mxu0 %v3062_v15  ;;  %2841 = vmatpush3.bf16.msra.mxu1 %v3063_v16 }
  0xa5   : > { %2822 = vmatprep.subr.bf16.mxu0 %v3421_v0  ;;  %2842 = vmatprep.subr.bf16.mxu1 %v3421_v0 }
  0xa8   : > { %2823 = vmatpush3.bf16.msra.mxu0 %v3064_v17  ;;  %2843 = vmatpush3.bf16.msra.mxu1 %v3065_v18 }
  0xa9   : > { %2848 = vmatprep.subr.bf16.mxu0 %v3421_v0  ;;  %2868 = vmatprep.subr.bf16.mxu1 %v3421_v0 }
 0x104   : > { %v878_v37 = vpop.permute.xlu1 %877 }
 0x105   : > { %v3808_v38 = vsel %vm870_vm1, %v858_v19, %v878_v37 }
 0x106   : > { %920 = vrot.lane.b32.xlu1 %v3808_v38, %s3424_s7 }
 0x108   : > { %v891_v52 = vpop.permute.xlu1 %890 }
 0x109   : > { %v899_v54 = vsel %vm870_vm1, %v859_v36, %v891_v52 }
 0x116   : > { %v529_v20 = vpop.xlane.xlu0 %528 }
 0x117   : > { %v531_v21 = vmul.f32 0.0078125, %v529_v20 }
 0x119   : > { %v532_v22 = vadd.f32 1e-05, %v531_v21 }
 0x11b   : > { %3146 = vrsqrt.f32 %v532_v22 }
 0x128   : > { %v3147_v23 = vpop.eup %3146 }
 0x129   : > { %v534_v25 = vmul.f32 %v3147_v23, %v3691_v1 }
 0x12b   : > { %v542_v26 = vmul.f32 %v2630_v24, %v534_v25 }
 0x12d   : > { %v543_v28 = vpack.c.bf16 %v542_v26, %v542_v26  ;;  %v3430_v26 = vmov 1983009808  }
 0x12f   : > { %2825 = vmatmul.mubr.bf16.vlgmr.msra.gmra.mxu0 %v543_v28  ;;  %2845 = vmatmul.mubr.bf16.vlgmr.msra.gmra.mxu1 %v543_v28 }
 0x130   : > { %2849 = vmatpush3.bf16.msra.mxu0 %v3066_v27  ;;  %2864 = vmatprep.mubr.msk.bf16.mxu0 %vm3422_vm0, %v3421_v0  ;;  %v952_v27 = vunpack.c.l.s4 %v3430_v26 }
 0x131   : > { %2850 = vmatprep.subr.bf16.mxu0 %v3421_v0  ;;  %2870 = vmatprep.mubr.msk.bf16.mxu1 %vm3422_vm0, %v3421_v0 }
 0x134   : > { %2851 = vmatpush3.bf16.msra.mxu0 %v3067_v29  ;;  %v3431_v29 = vmov 1934713408  }
 0x135   : > { %2852 = vmatprep.subr.bf16.mxu0 %v3421_v0 }
 0x138   : > { %2853 = vmatpush3.bf16.msra.mxu0 %v3068_v30  ;;  %v984_v30 = vunpack.c.l.s4 %v3431_v29 }
 0x139   : > { %2854 = vmatprep.subr.bf16.mxu0 %v3421_v0 }
 0x13c   : > { %2855 = vmatpush3.bf16.msra.mxu0 %v3069_v31  ;;  %v953_v31 = vunpack.c.0.s8 %v952_v27 }
 0x13d   : > { %2856 = vmatprep.subr.bf16.mxu0 %v3421_v0 }
 0x140   : > { %2857 = vmatpush3.bf16.msra.mxu0 %v3070_v32 }
 0x141   : > { %2858 = vmatprep.subr.bf16.mxu0 %v3421_v0 }
 0x144   : > { %2859 = vmatpush3.bf16.msra.mxu0 %v3071_v33  ;;  %v985_v33 = vunpack.c.0.s8 %v984_v30 }
 0x145   : > { %2860 = vmatprep.subr.bf16.mxu0 %v3421_v0 }
 0x148   : > { %2861 = vmatpush3.bf16.msra.mxu0 %v3072_v34 }
 0x149   : > { %2862 = vmatprep.subr.bf16.mxu0 %v3421_v0 }
 0x14c   : > { %2863 = vmatpush3.bf16.msra.mxu0 %v3073_v35 }
 0x14d   : > { %2892 = vmatprep.subr.bf16.mxu0 %v3421_v0 }
 0x14f   : > { %2865 = vmatmul.mubr.bf16.vlgmr.msra.gmra.mxu0 %v543_v28  ;;  %v954_v28 = vlaneseq }
 0x150   : > { %2894 = vmatprep.mubr.msk.bf16.mxu0 %vm3422_vm0, %v3421_v0 }
 0x151   : > { %v3841_v32 = vshrl.u32 %v954_v28, 7 }
 0x153   : > { %v3844_v34 = vsub.s32 %v953_v31, %v3841_v32 }
 0x178   : > { %v921_v56 = vpop.permute.xlu1 %920 }
 0x1ef   : > { %v642_v39 = vpop.f32.mrf.mxu0  ;;  %v746_v40 = vpop.f32.mrf.mxu1 }
 0x1f0   : > { %913 = vrot.lane.b32.xlu0 %v746_v40, %s3425_s9  ;;  %v856_v62 = vmul.f32 0.17677669, %v642_v39 }
 0x1f1   : > { %v2826_v41 = vpop.f32.mrf.mxu0  ;;  %v2846_v42 = vpop.f32.mrf.mxu1 }
 0x1f3   : > { %v645_v43 = vpop.f32.mrf.mxu0  ;;  %v749_v44 = vpop.f32.mrf.mxu1 }
 0x1f4   : > { %880 = vrot.lane.b32.xlu0 %v858_v19, %s3425_s9 }
 0x1f5   : > { %v2827_v45 = vpop.f32.mrf.mxu0  ;;  %v2847_v46 = vpop.f32.mrf.mxu1 }
 0x1f8   : > { %883 = vrot.lane.b32.xlu0 %v858_v19, %s3426_s15 }
 0x20f   : > { %v3815_v47 = vpop.f32.mrf.mxu0 }
 0x211   : > { %v2866_v48 = vpop.f32.mrf.mxu0 }
 0x213   : > { %v853_v49 = vpop.f32.mrf.mxu0 }
 0x215   : > { %v2867_v50 = vpop.f32.mrf.mxu0 }
 0x262   : > { %v914_v51 = vpop.permute.xlu0 %913 }
 0x263   : > { %v915_v53 = vsel %vm912_vm2, %v914_v51, %v746_v40 }
 0x264   : > { %916 = vrot.lane.b32.xlu1 %v915_v53, %s3425_s9 }
 0x266   : > { %v881_v2 = vpop.permute.xlu0 %880 }
 0x267   : > { %v887_v13 = vsel %vm872_vm3, %v3808_v38, %v881_v2  ;;  %v3849_v38 = vsub.s32 %v985_v33, %v3841_v32 }
 0x268   : > { %930 = vrot.lane.b32.xlu1 %v899_v54, %s3427_s20 }
 0x26a   : > { %v884_v5 = vpop.permute.xlu0 %883 }
 0x26b   : > { %v888_v15 = vsel %vm874_vm4, %v887_v13, %v884_v5 }
 0x26c   : > { %861 = vrot.lane.b32.xlu1 %v857_v55, %s3423_s24 }
 0x270   : > { %864 = vrot.lane.b32.xlu1 %v857_v55, %s3425_s9 }
 0x274   : > { %867 = vrot.lane.b32.xlu1 %v857_v55, %s3426_s15 }
 0x2d6   : > { %v917_v57 = vpop.permute.xlu1 %916 }
 0x2d7   : > { %v918_v58 = vsel %vm912_vm2, %v917_v57, %v746_v40 }
 0x2d8   : > { %v923_v59 = vmul.f32 %v921_v56, %v918_v58 }
 0x2da   : > { %925 = vrot.lane.b32.xlu1 %v923_v59, %s3428_s16  ;;  %v931_v60 = vpop.permute.xlu1 %930 }
 0x2db   : > { %v933_v61 = vmul.f32 %v931_v60, %v918_v58 }
 0x2dd   : > { %935 = vrot.lane.b32.xlu0 %v933_v61, %s3429_s19 }
 0x2de   : > { %893 = vrot.lane.b32.xlu1 %v859_v36, %s3425_s9  ;;  %v862_v63 = vpop.permute.xlu1 %861 }
 0x2df   : > { %v871_v3 = vsel %vm870_vm1, %v857_v55, %v862_v63 }
 0x2e0   : > { %v911_v6 = vmul.f32 %v871_v3, %v746_v40 }
 0x2e1   : > { %903 = vrot.lane.b32.xlu0 %v856_v62, %s3428_s16 }
 0x2e2   : > { %896 = vrot.lane.b32.xlu1 %v859_v36, %s3426_s15  ;;  %v865_v1 = vpop.permute.xlu1 %864 }
 0x2e3   : > { %v873_v10 = vsel %vm872_vm3, %v871_v3, %v865_v1 }
 0x2e5   : > { %907 = vrot.lane.b32.xlu0 %v856_v62, %s3424_s7 }
 0x2e6   : > { %v868_v4 = vpop.permute.xlu1 %867 }
 0x2e7   : > { %v875_v14 = vsel %vm874_vm4, %v873_v10, %v868_v4 }
 0x2e8   : > { %v902_v19 = vmul.f32 %v875_v14, %v856_v62 }
 0x34c   : > { %v926_v7 = vpop.permute.xlu1 %925 }
 0x34d   : > { %v928_v8 = vadd.f32 %v926_v7, %v911_v6 }
 0x34f   : > { %v936_v9 = vpop.permute.xlu0 %935 }
 0x350   : > { %v938_v11 = vadd.f32 %v936_v9, %v928_v8  ;;  %v894_v12 = vpop.permute.xlu1 %893 }
 0x351   : > { %v900_v20 = vsel %vm872_vm3, %v899_v54, %v894_v12 }
 0x352   : > { %1086 = vrot.lane.b32.xlu1 %v938_v11, %s3426_s15  ;;  %v1089_v35 = vcombine.high %v938_v11, %v3421_v0  ;;  %v1096_v37 = vrot.slane %v938_v11, %v3844_v34 }
 0x353   : > { %v904_v16 = vpop.permute.xlu0 %903 }
 0x354   : > { %v905_v17 = vmul.f32 %v904_v16, %v888_v15  ;;  %v897_v18 = vpop.permute.xlu1 %896  ;;  %v1103_v41 = vrot.slane %v1089_v35, %v3844_v34 }
 0x355   : > { %v901_v21 = vsel %vm874_vm4, %v900_v20, %v897_v18 }
 0x356   : > { %v906_v23 = vadd.f32 %v905_v17, %v902_v19 }
 0x357   : > { %v908_v22 = vpop.permute.xlu0 %907 }
 0x358   : > { %v909_v24 = vmul.f32 %v908_v22, %v901_v21 }
 0x35a   : > { %v910_v25 = vadd.f32 %v909_v24, %v906_v23 }
 0x35c   : > { %943 = vrot.lane.b32.xlu1 %v910_v25, %s3425_s9  ;;  %940 = vrot.lane.b32.xlu0 %v910_v25, %s3426_s15 }
 0x360   : > { %946 = vrot.lane.b32.xlu0 %v910_v25, %s3423_s24 }
 0x3c4   : > { %v1087_v36 = vpop.permute.xlu1 %1086 }
 0x3c5   : > { %v1104_v39 = vcombine.high %v1087_v36, %v3421_v0  ;;  %v1111_v40 = vrot.slane %v1087_v36, %v3844_v34 }
 0x3c7   : > { %v1118_v42 = vrot.slane %v1104_v39, %v3844_v34  ;;  %v1119_v43 = vcombine.low %v1096_v37, %v1111_v40  ;;  %v1120_v44 = vcombine.high %v1096_v37, %v1111_v40 }
 0x3c9   : > { %v1127_v45 = vrot.slane %v1119_v43, %v3849_v38  ;;  %v1134_v46 = vrot.slane %v1120_v44, %v3849_v38  ;;  %v1135_v48 = vcombine.low %v1103_v41, %v1118_v42  ;;  %v1136_v49 = vcombine.high %v1103_v41, %v1118_v42 }
 0x3cb   : > { %v1143_v50 = vrot.slane %v1135_v48, %v3849_v38  ;;  %v1150_v51 = vrot.slane %v1136_v49, %v3849_v38  ;;  %v1155_v52 = vcombine.low %v1127_v45, %v1134_v46  ;;  %v2657_v53 = vcombine.high %v1127_v45, %v1134_v46 }
 0x3cd   : > { %v1162_v54 = vrot.slane %v1155_v52, %v3844_v34  ;;  %v1170_v55 = vrot.slane %v2657_v53, %v3844_v34  ;;  %v1171_v56 = vcombine.low %v1143_v50, %v1150_v51  ;;  %v2658_v57 = vcombine.high %v1143_v50, %v1150_v51 }
 0x3ce   : > { %v944_v58 = vpop.permute.xlu1 %943  ;;  %v941_v59 = vpop.permute.xlu0 %940 }
 0x3cf   : > { %v1178_v60 = vrot.slane %v1171_v56, %v3844_v34  ;;  %v1186_v61 = vrot.slane %v2658_v57, %v3844_v34  ;;  %v949_v62 = vcombine.low %v910_v25, %v944_v58  ;;  %v1187_v63 = vcombine.low %v1162_v54, %v1170_v55 }
 0x3d0   : > { %v950_v1 = vcombine.high %v910_v25, %v944_v58  ;;  %v1328_v55 = vand.u32 127, %v954_v28  ;;  %v3432_v56 = vmov -1e+09  }
 0x3d1   : > { %v1195_v2 = vcombine.low %v1178_v60, %v1186_v61  ;;  %v1194_v6 = vrot.slane %v1187_v63, %v3849_v38  ;;  %v957_v8 = vrot.slane %v949_v62, %v3844_v34 }
 0x3d2   : > { %v947_v3 = vpop.permute.xlu0 %946  ;;  %v964_v9 = vrot.slane %v950_v1, %v3844_v34  ;;  %vm1329_vm5 = vcmp.ge.s32.totalorder %v3841_v32, %v1328_v55 }
 0x3d3   : > { %v965_v4 = vcombine.low %v941_v59, %v947_v3  ;;  %v966_v5 = vcombine.high %v941_v59, %v947_v3  ;;  %v1202_v7 = vrot.slane %v1195_v2, %v3849_v38  ;;  %v1330_v57 = vsel %vm1329_vm5, 0.0, %v3432_v56 }
 0x3d5   : > { %v973_v10 = vrot.slane %v965_v4, %v3844_v34  ;;  %v980_v11 = vrot.slane %v966_v5, %v3844_v34  ;;  %v1203_v12 = vcombine.low %v1194_v6, %v1202_v7  ;;  %v1204_v41 = vcombine.high %v1194_v6, %v1202_v7 }
 0x3d7   : > { %v981_v13 = vcombine.low %v957_v8, %v973_v10  ;;  %v982_v14 = vcombine.high %v957_v8, %v973_v10  ;;  %v997_v15 = vcombine.low %v964_v9, %v980_v11  ;;  %v998_v16 = vcombine.high %v964_v9, %v980_v11 }
 0x3d8   : > { %v1335_v17 = vpack.c.bf16 %v1203_v12, %v1203_v12  ;;  %v1336_v45 = vpack.c.bf16 %v1204_v41, %v1204_v41 }
 0x3d9   : > { %v989_v18 = vrot.slane %v981_v13, %v3849_v38  ;;  %v996_v19 = vrot.slane %v982_v14, %v3849_v38  ;;  %v1005_v20 = vrot.slane %v997_v15, %v3849_v38  ;;  %v1012_v21 = vrot.slane %v998_v16, %v3849_v38 }
 0x3da   : > { %v1341_v22 = vsel %vm870_vm1, %v1335_v17, 0  ;;  %v1430_v50 = vsel %vm870_vm1, %v1336_v45, 0 }
 0x3db   : > { %v1017_v23 = vcombine.low %v989_v18, %v996_v19  ;;  %v2655_v24 = vcombine.high %v989_v18, %v996_v19  ;;  %v1033_v25 = vcombine.low %v1005_v20, %v1012_v21  ;;  %v2656_v26 = vcombine.high %v1005_v20, %v1012_v21  ;;  %2869 = vmatpush3.bf16.xpose.msra.mxu1 %v1341_v22 }
 0x3dc   : > { %2874 = vmatprep.subr.bf16.mxu1 %v3421_v0 }
 0x3dd   : > { %v1024_v27 = vrot.slane %v1017_v23, %v3844_v34  ;;  %v1032_v29 = vrot.slane %v2655_v24, %v3844_v34  ;;  %v1040_v30 = vrot.slane %v1033_v25, %v3844_v34  ;;  %v1048_v31 = vrot.slane %v2656_v26, %v3844_v34 }
 0x3df   : > { %v1049_v33 = vcombine.low %v1024_v27, %v1032_v29  ;;  %v1065_v35 = vcombine.low %v1040_v30, %v1048_v31  ;;  %v1050_v42 = vcombine.high %v1024_v27, %v1032_v29  ;;  %v1066_v43 = vcombine.high %v1040_v30, %v1048_v31 }
 0x3e1   : > { %v1057_v36 = vrot.slane %v1049_v33, %v3849_v38  ;;  %v1073_v37 = vrot.slane %v1065_v35, %v3849_v38  ;;  %v1064_v48 = vrot.slane %v1050_v42, %v3849_v38  ;;  %v1080_v49 = vrot.slane %v1066_v43, %v3849_v38 }
 0x3e2   : > { %v1209_v42 = vcombine.high %v3815_v47, %v3421_v0 }
 0x3e3   : > { %v1081_v39 = vcombine.low %v1057_v36, %v1073_v37  ;;  %v1082_v44 = vcombine.high %v1057_v36, %v1073_v37  ;;  %v1083_v51 = vcombine.low %v1064_v48, %v1080_v49  ;;  %v1084_v53 = vcombine.high %v1064_v48, %v1080_v49 }
 0x3e4   : > { %v1223_v48 = vrot.slane %v1209_v42, %v3844_v34 }
 0x3e5   : > { %v1331_v40 = vpack.c.bf16 %v1081_v39, %v1081_v39  ;;  %v1332_v46 = vpack.c.bf16 %v1082_v44, %v1082_v44  ;;  %v1333_v52 = vpack.c.bf16 %v1083_v51, %v1083_v51  ;;  %v1334_v54 = vpack.c.bf16 %v1084_v53, %v1084_v53 }
 0x3e6   : > { %v1216_v44 = vrot.slane %v3815_v47, %v3844_v34 }
 0x3e7   : > { %2871 = vmatmul.mubr.msk.bf16.vlgmr.msra.gmra.mxu1 %vm870_vm1, %v1331_v40 }
 0x3e8   : > { %2875 = vmatpush3.bf16.xpose.msra.mxu1 %v1341_v22  ;;  %2876 = vmatprep.mubr.msk.bf16.mxu1 %vm3422_vm0, %v3421_v0 }
 0x3e9   : > { %2880 = vmatprep.subr.bf16.mxu1 %v3421_v0 }
 0x3ef   : > { %2877 = vmatmul.mubr.msk.bf16.vlgmr.msra.gmra.mxu1 %vm870_vm1, %v1332_v46 }
 0x3f0   : > { %2881 = vmatpush3.bf16.xpose.msra.mxu1 %v1430_v50  ;;  %2882 = vmatprep.mubr.msk.bf16.mxu1 %vm3422_vm0, %v3421_v0 }
 0x3f1   : > { %2886 = vmatprep.subr.bf16.mxu1 %v3421_v0 }
 0x3f7   : > { %2883 = vmatmul.mubr.msk.bf16.vlgmr.msra.gmra.mxu1 %vm870_vm1, %v1333_v52 }
 0x3f8   : > { %2887 = vmatpush3.bf16.xpose.msra.mxu1 %v1430_v50  ;;  %2888 = vmatprep.mubr.msk.bf16.mxu1 %vm3422_vm0, %v3421_v0 }
 0x3f9   : > { %2898 = vmatprep.subr.bf16.mxu1 %v3421_v0 }
 0x3ff   : > { %2889 = vmatmul.mubr.msk.bf16.vlgmr.msra.gmra.mxu1 %vm870_vm1, %v1334_v54 }
 0x400   : > { %2900 = vmatprep.mubr.msk.bf16.mxu1 %vm3422_vm0, %v3421_v0 }
 0x4a7   : > { %v1377_v58 = vpop.f32.mrf.mxu1 }
 0x4a8   : > { %v1378_v59 = vadd.f32 %v1377_v58, %v1330_v57 }
 0x4a9   : > { %v2872_v60 = vpop.f32.mrf.mxu1 }
 0x4aa   : > { %v1516_v61 = vsel %vm1515_vm6, %v1378_v59, -inf }
 0x4ab   : > { %1517 = vmax.xlane.f32.xlu1 %v1516_v61  ;;  %v1380_v62 = vpop.f32.mrf.mxu1 }
 0x4ad   : > { %v2873_v63 = vpop.f32.mrf.mxu1 }
 0x4af   : > { %v1420_v1 = vpop.f32.mrf.mxu1 }
 0x4b0   : > { %v1421_v2 = vadd.f32 %v1420_v1, %v1330_v57 }
 0x4b1   : > { %v2878_v3 = vpop.f32.mrf.mxu1 }
 0x4b2   : > { %v1519_v4 = vsel %vm1515_vm6, %v1421_v2, -inf }
 0x4b3   : > { %1520 = vmax.xlane.f32.xlu0 %v1519_v4  ;;  %v1423_v28 = vpop.f32.mrf.mxu1 }
 0x4b5   : > { %v2879_v5 = vpop.f32.mrf.mxu1 }
 0x4b7   : > { %v1466_v32 = vpop.f32.mrf.mxu1 }
 0x4b8   : > { %v1467_v6 = vadd.f32 %v1466_v32, %v1330_v57 }
 0x4b9   : > { %v2884_v7 = vpop.f32.mrf.mxu1 }
 0x4ba   : > { %v1522_v8 = vsel %vm1515_vm6, %v1467_v6, -inf }
 0x4bb   : > { %1523 = vmax.xlane.f32.xlu0 %v1522_v8  ;;  %v1469_v9 = vpop.f32.mrf.mxu1 }
 0x4bd   : > { %v2885_v10 = vpop.f32.mrf.mxu1 }
 0x4bf   : > { %v1509_v11 = vpop.f32.mrf.mxu1 }
 0x4c0   : > { %v1510_v12 = vadd.f32 %v1509_v11, %v1330_v57 }
 0x4c1   : > { %v2890_v13 = vpop.f32.mrf.mxu1 }
 0x4c2   : > { %v1525_v14 = vsel %vm1515_vm6, %v1510_v12, -inf }
 0x4c3   : > { %1526 = vmax.xlane.f32.xlu1 %v1525_v14  ;;  %v1512_v15 = vpop.f32.mrf.mxu1 }
 0x4c5   : > { %v2891_v16 = vpop.f32.mrf.mxu1 }
 0x534   : > { %v1518_v17 = vpop.xlane.xlu1 %1517 }
 0x535   : > { %v1528_v18 = vsub.f32 %v1378_v59, %v1518_v17 }
 0x537   : > { %v1532_v19 = vmul.f32 1.442695, %v1528_v18 }
 0x539   : > { %3148 = vpow2.f32 %v1532_v19 }
 0x53c   : > { %v1521_v20 = vpop.xlane.xlu0 %1520 }
 0x53d   : > { %v1529_v21 = vsub.f32 %v1421_v2, %v1521_v20 }
 0x53f   : > { %v1534_v22 = vmul.f32 1.442695, %v1529_v21 }
 0x541   : > { %3150 = vpow2.f32 %v1534_v22 }
 0x544   : > { %v1524_v23 = vpop.xlane.xlu0 %1523 }
 0x545   : > { %v1530_v24 = vsub.f32 %v1467_v6, %v1524_v23 }
 0x546   : > { %v3149_v25 = vpop.eup %3148 }
 0x547   : > { %v1536_v26 = vmul.f32 1.442695, %v1530_v24  ;;  %v1540_v27 = vsel %vm1515_vm6, %v3149_v25, 0.0 }
 0x548   : > { %1541 = vadd.xlane.f32.xlu0 %v1540_v27  ;;  %v3076_v27 = vld [vmem:[#allocation8 + $0x28] sm:$0xff]  }
 0x549   : > { %3152 = vpow2.f32 %v1536_v26  ;;  %v3075_v26 = vld [vmem:[#allocation8 + $0x30] sm:$0xff]  }
 0x54c   : > { %v1527_v29 = vpop.xlane.xlu1 %1526 }
 0x54d   : > { %v1531_v30 = vsub.f32 %v1510_v12, %v1527_v29  ;;  %v3077_v29 = vld [vmem:[#allocation8 + $0x20] sm:$0xff]  }
 0x54e   : > { %v3151_v31 = vpop.eup %3150 }
 0x54f   : > { %v1538_v33 = vmul.f32 1.442695, %v1531_v30  ;;  %v1543_v35 = vsel %vm1515_vm6, %v3151_v31, 0.0  ;;  %v3078_v30 = vld [vmem:[#allocation8 + $0x18] sm:$0xff]  }
 0x550   : > { %1544 = vadd.xlane.f32.xlu1 %v1543_v35 }
 0x551   : > { %3154 = vpow2.f32 %v1538_v33 }
 0x556   : > { %v3907_v36 = vpop.eup %3152 }
 0x557   : > { %v1546_v37 = vsel %vm1515_vm6, %v3907_v36, 0.0 }
 0x558   : > { %1547 = vadd.xlane.f32.xlu1 %v1546_v37 }
 0x55e   : > { %v3911_v39 = vpop.eup %3154  ;;  %1206 = vrot.lane.b32.xlu0 %v3815_v47, %s3426_s15 }
 0x55f   : > { %v1549_v40 = vsel %vm1515_vm6, %v3911_v39, 0.0 }
 0x560   : > { %1550 = vadd.xlane.f32.xlu1 %v1549_v40 }
 0x5d1   : > { %v1542_v41 = vpop.xlane.xlu0 %1541 }
 0x5d2   : > { %3156 = vrcp.f32 %v1542_v41 }
 0x5d5   : > { %v1207_v43 = vpop.permute.xlu0 %1206 }
 0x5d6   : > { %v1224_v45 = vcombine.high %v1207_v43, %v3421_v0  ;;  %v1231_v46 = vrot.slane %v1207_v43, %v3844_v34 }
 0x5d8   : > { %v1238_v49 = vrot.slane %v1224_v45, %v3844_v34  ;;  %v1239_v50 = vcombine.low %v1216_v44, %v1231_v46  ;;  %v1240_v51 = vcombine.high %v1216_v44, %v1231_v46 }
 0x5d9   : > { %v1545_v52 = vpop.xlane.xlu1 %1544 }
 0x5da   : > { %v1247_v53 = vrot.slane %v1239_v50, %v3849_v38  ;;  %v1254_v54 = vrot.slane %v1240_v51, %v3849_v38  ;;  %v1255_v55 = vcombine.low %v1223_v48, %v1238_v49  ;;  %v1256_v56 = vcombine.high %v1223_v48, %v1238_v49 }
 0x5db   : > { %3158 = vrcp.f32 %v1545_v52 }
 0x5dc   : > { %v1263_v47 = vrot.slane %v1255_v55, %v3849_v38  ;;  %v1270_v57 = vrot.slane %v1256_v56, %v3849_v38  ;;  %v1275_v58 = vcombine.low %v1247_v53, %v1254_v54  ;;  %v2659_v59 = vcombine.high %v1247_v53, %v1254_v54 }
 0x5de   : > { %v1282_v60 = vrot.slane %v1275_v58, %v3844_v34  ;;  %v1290_v61 = vrot.slane %v2659_v59, %v3844_v34  ;;  %v1291_v62 = vcombine.low %v1263_v47, %v1270_v57  ;;  %v2660_v63 = vcombine.high %v1263_v47, %v1270_v57 }
 0x5df   : > { %v3157_v6 = vpop.eup %3156 }
 0x5e0   : > { %v1298_v1 = vrot.slane %v1291_v62, %v3844_v34  ;;  %v1306_v2 = vrot.slane %v2660_v63, %v3844_v34  ;;  %v1307_v3 = vcombine.low %v1282_v60, %v1290_v61  ;;  %v1556_v11 = vmul.f32 %v3157_v6, %v3149_v25  ;;  %v3074_v25 = vld [vmem:[#allocation8 + $0x38] sm:$0xff]   ;;  %v3080_v62 = vld [vmem:[#allocation8 + $0x8] sm:$0xff]  }
 0x5e1   : > { %v1548_v4 = vpop.xlane.xlu1 %1547 }
 0x5e2   : > { %3160 = vrcp.f32 %v1548_v4  ;;  %v1315_v28 = vcombine.low %v1298_v1, %v1306_v2  ;;  %v1314_v5 = vrot.slane %v1307_v3, %v3849_v38  ;;  %v1560_v16 = vpack.c.bf16 %v1556_v11, %v1556_v11 }
 0x5e4   : > { %v1322_v32 = vrot.slane %v1315_v28, %v3849_v38 }
 0x5e6   : > { %v1323_v7 = vcombine.low %v1314_v5, %v1322_v32  ;;  %v1324_v8 = vcombine.high %v1314_v5, %v1322_v32 }
 0x5e8   : > { %v3159_v9 = vpop.eup %3158  ;;  %v1564_v10 = vpack.c.bf16 %v1323_v7, %v1323_v7  ;;  %v1565_v15 = vpack.c.bf16 %v1324_v8, %v1324_v8  ;;  %v3081_v7 = vld [vmem:[#allocation8] sm:$0xff]  }
 0x5e9   : > { %v1551_v12 = vpop.xlane.xlu1 %1550  ;;  %v1557_v13 = vmul.f32 %v3159_v9, %v3151_v31  ;;  %v3079_v31 = vld [vmem:[#allocation8 + $0x10] sm:$0xff]  }
 0x5ea   : > { %3162 = vrcp.f32 %v1551_v12  ;;  %v1571_v14 = vsel %vm1569_vm7, %v1564_v10, 0  ;;  %v1660_v18 = vsel %vm1569_vm7, %v1565_v15, 0 }
 0x5eb   : > { %2893 = vmatpush3.bf16.msra.mxu0 %v1571_v14  ;;  %2899 = vmatpush3.bf16.msra.mxu1 %v1571_v14  ;;  %v1561_v17 = vpack.c.bf16 %v1557_v13, %v1557_v13 }
 0x5ec   : > { %2904 = vmatprep.subr.bf16.mxu0 %v3421_v0  ;;  %2910 = vmatprep.subr.bf16.mxu1 %v3421_v0 }
 0x5ee   : > { %2895 = vmatmul.mubr.msk.bf16.vlgmr.msra.gmra.mxu0 %vm1515_vm6, %v1560_v16  ;;  %2901 = vmatmul.mubr.msk.bf16.vlgmr.msra.gmra.mxu1 %vm1515_vm6, %v1561_v17 }
 0x5ef   : > { %v3161_v19 = vpop.eup %3160  ;;  %2905 = vmatpush3.bf16.msra.mxu0 %v1660_v18  ;;  %2911 = vmatpush3.bf16.msra.mxu1 %v1660_v18 }
 0x5f0   : > { %2906 = vmatprep.mubr.msk.bf16.mxu0 %vm3422_vm0, %v3421_v0  ;;  %v1558_v20 = vmul.f32 %v3161_v19, %v3907_v36  ;;  %2912 = vmatprep.mubr.msk.bf16.mxu1 %vm3422_vm0, %v3421_v0 }
 0x5f1   : > { %2916 = vmatprep.subr.bf16.mxu0 %v3421_v0 }
 0x5f2   : > { %v1562_v21 = vpack.c.bf16 %v1558_v20, %v1558_v20 }
 0x5f6   : > { %2907 = vmatmul.mubr.msk.bf16.vlgmr.msra.gmra.mxu0 %vm1515_vm6, %v1562_v21 }
 0x5f7   : > { %v3163_v22 = vpop.eup %3162  ;;  %2932 = vmatprep.mubr.msk.bf16.mxu0 %vm3422_vm0, %v3421_v0  ;;  %2917 = vmatpush3.bf16.msra.mxu0 %v3074_v25 }
 0x5f8   : > { %v1559_v23 = vmul.f32 %v3163_v22, %v3911_v39  ;;  %2918 = vmatprep.subr.bf16.mxu0 %v3421_v0 }
 0x5fa   : > { %v1563_v24 = vpack.c.bf16 %v1559_v23, %v1559_v23 }
 0x5fb   : > { %2919 = vmatpush3.bf16.msra.mxu0 %v3075_v26 }
 0x5fc   : > { %2913 = vmatmul.mubr.msk.bf16.vlgmr.msra.gmra.mxu1 %vm1515_vm6, %v1563_v24  ;;  %2920 = vmatprep.subr.bf16.mxu0 %v3421_v0 }
 0x5ff   : > { %2921 = vmatpush3.bf16.msra.mxu0 %v3076_v27 }
 0x600   : > { %2922 = vmatprep.subr.bf16.mxu0 %v3421_v0 }
 0x603   : > { %2923 = vmatpush3.bf16.msra.mxu0 %v3077_v29  ;;  %v3082_v29 = vld [vmem:[%s4090_s8 + $0x70] ss:$8 sps:$4 sm:$0xff]  }
 0x604   : > { %2924 = vmatprep.subr.bf16.mxu0 %v3421_v0 }
 0x607   : > { %2925 = vmatpush3.bf16.msra.mxu0 %v3078_v30  ;;  %v3084_v30 = vld [vmem:[%s4090_s8 + $0x74] ss:$8 sps:$4 sm:$0xff]  }
 0x608   : > { %2926 = vmatprep.subr.bf16.mxu0 %v3421_v0  ;;  %2114 = vmatprep.subr.bf16.mxu1 %v3084_v30 }
 0x609   : > { %2115 = vmatpush1.bf16.msra.mxu1 %v3082_v29 }
 0x60b   : > { %2927 = vmatpush3.bf16.msra.mxu0 %v3079_v31  ;;  %v3085_v31 = vld [vmem:[#allocation10 + $0x70] ss:$8 sps:$4 sm:$0xff]  }
 0x60c   : > { %2928 = vmatprep.subr.bf16.mxu0 %v3421_v0 }
 0x60f   : > { %2929 = vmatpush3.bf16.msra.mxu0 %v3080_v62  ;;  %v3115_v62 = vld [vmem:[#allocation10 + $0x20] ss:$8 sps:$4 sm:$0xff]  }
 0x610   : > { %2930 = vmatprep.subr.bf16.mxu0 %v3421_v0 }
 0x613   : > { %2931 = vmatpush3.bf16.msra.mxu0 %v3081_v7 }
 0x6ae   : > { %v1607_v33 = vpop.f32.mrf.mxu0  ;;  %v1650_v35 = vpop.f32.mrf.mxu1 }
 0x6b0   : > { %v2896_v36 = vpop.f32.mrf.mxu0  ;;  %v2902_v37 = vpop.f32.mrf.mxu1 }
 0x6b1   : > { %v3093_v36 = vld [vmem:[#allocation10 + $0x64] ss:$8 sps:$4 sm:$0xff]   ;;  %v3088_v37 = vld [vmem:[%s4090_s8 + $0x60] ss:$8 sps:$4 sm:$0xff]  }
 0x6b2   : > { %v1610_v39 = vpop.f32.mrf.mxu0  ;;  %v1653_v40 = vpop.f32.mrf.mxu1 }
 0x6b3   : > { %v3091_v39 = vld [vmem:[#allocation10 + $0x60] ss:$8 sps:$4 sm:$0xff]  }
 0x6b4   : > { %v2897_v41 = vpop.f32.mrf.mxu0  ;;  %v2903_v42 = vpop.f32.mrf.mxu1 }
 0x6b5   : > { %v3174_v41 = vld [vmem:[%s3670_s21] sm:$0xff]  ;;  %s2481_s21 = scalar_lea.sflag [#allocation4], %s3664_s10 }
 0x6b6   : > { %v1696_v43 = vpop.f32.mrf.mxu0 }
 0x6b7   : > { %v1745_v46 = vcombine.low %v1607_v33, %v1696_v43  ;;  %v1746_v48 = vcombine.high %v1607_v33, %v1696_v43  ;;  %v3087_v33 = vld [vmem:[#allocation10 + $0x74] ss:$8 sps:$4 sm:$0xff]  }
 0x6b8   : > { %v2908_v44 = vpop.f32.mrf.mxu0  ;;  %2251 = vmatprep.subr.bf16.mxu0 %v3087_v33 }
 0x6b9   : > { %v1753_v54 = vrot.slane %v1745_v46, %v3844_v34  ;;  %v1760_v55 = vrot.slane %v1746_v48, %v3844_v34  ;;  %v3096_v48 = vld [vmem:[%s4090_s8 + $0x54] ss:$8 sps:$4 sm:$0xff]  }
 0x6ba   : > { %v1699_v45 = vpop.f32.mrf.mxu0 }
 0x6bc   : > { %v2909_v49 = vpop.f32.mrf.mxu0  ;;  %v1739_v50 = vpop.f32.mrf.mxu1 }
 0x6bd   : > { %v1761_v51 = vcombine.low %v1650_v35, %v1739_v50  ;;  %v1762_v52 = vcombine.high %v1650_v35, %v1739_v50  ;;  %v3090_v35 = vld [vmem:[%s4090_s8 + $0x64] ss:$8 sps:$4 sm:$0xff]   ;;  %v3099_v49 = vld [vmem:[#allocation10 + $0x54] ss:$8 sps:$4 sm:$0xff]   ;;  %v3094_v50 = vld [vmem:[%s4090_s8 + $0x50] ss:$8 sps:$4 sm:$0xff]  }
 0x6be   : > { %v2914_v53 = vpop.f32.mrf.mxu1  ;;  %2116 = vmatprep.subr.bf16.mxu1 %v3090_v35 }
 0x6bf   : > { %v1769_v56 = vrot.slane %v1761_v51, %v3844_v34  ;;  %v1776_v47 = vrot.slane %v1762_v52, %v3844_v34  ;;  %2117 = vmatpush1.bf16.msra.mxu1 %v3088_v37  ;;  %v3097_v51 = vld [vmem:[#allocation10 + $0x50] ss:$8 sps:$4 sm:$0xff]   ;;  %v3102_v52 = vld [vmem:[%s4090_s8 + $0x44] ss:$8 sps:$4 sm:$0xff]  }
 0x6c0   : > { %v1742_v57 = vpop.f32.mrf.mxu1  ;;  %2118 = vmatprep.subr.bf16.mxu1 %v3096_v48  ;;  %v3105_v53 = vld [vmem:[#allocation10 + $0x44] ss:$8 sps:$4 sm:$0xff]  }
 0x6c1   : > { %v1777_v58 = vcombine.low %v1753_v54, %v1769_v56  ;;  %v1778_v59 = vcombine.high %v1753_v54, %v1769_v56  ;;  %v1793_v60 = vcombine.low %v1760_v55, %v1776_v47  ;;  %v1794_v61 = vcombine.high %v1760_v55, %v1776_v47  ;;  %v3100_v54 = vld [vmem:[%s4090_s8 + $0x40] ss:$8 sps:$4 sm:$0xff]   ;;  %v3108_v56 = vld [vmem:[%s4090_s8 + $0x34] ss:$8 sps:$4 sm:$0xff]   ;;  %v3106_v57 = vld [vmem:[%s4090_s8 + $0x30] ss:$8 sps:$4 sm:$0xff]  }
 0x6c2   : > { %v2915_v63 = vpop.f32.mrf.mxu1  ;;  %v3103_v55 = vld [vmem:[#allocation10 + $0x40] ss:$8 sps:$4 sm:$0xff]   ;;  %v3111_v47 = vld [vmem:[#allocation10 + $0x34] ss:$8 sps:$4 sm:$0xff]  }
 0x6c3   : > { %v1785_v1 = vrot.slane %v1777_v58, %v3849_v38  ;;  %v1792_v2 = vrot.slane %v1778_v59, %v3849_v38  ;;  %v1801_v3 = vrot.slane %v1793_v60, %v3849_v38  ;;  %v1808_v4 = vrot.slane %v1794_v61, %v3849_v38  ;;  %2119 = vmatpush1.bf16.msra.mxu1 %v3094_v50  ;;  %v3109_v58 = vld [vmem:[#allocation10 + $0x30] ss:$8 sps:$4 sm:$0xff]   ;;  %v3114_v59 = vld [vmem:[%s4090_s8 + $0x24] ss:$8 sps:$4 sm:$0xff]   ;;  %v3112_v61 = vld [vmem:[%s4090_s8 + $0x20] ss:$8 sps:$4 sm:$0xff]  }
 0x6c4   : > { %2120 = vmatprep.subr.bf16.mxu1 %v3102_v52  ;;  %v3117_v60 = vld [vmem:[#allocation10 + $0x24] ss:$8 sps:$4 sm:$0xff]   ;;  %v3120_v63 = vld [vmem:[%s4090_s8 + $0x14] ss:$8 sps:$4 sm:$0xff]  }
 0x6c5   : > { %v1813_v28 = vcombine.low %v1785_v1, %v1792_v2  ;;  %v2669_v5 = vcombine.high %v1785_v1, %v1792_v2  ;;  %v1829_v32 = vcombine.low %v1801_v3, %v1808_v4  ;;  %v2670_v6 = vcombine.high %v1801_v3, %v1808_v4  ;;  %v3123_v1 = vld [vmem:[#allocation10 + $0x14] ss:$8 sps:$4 sm:$0xff]   ;;  %v3118_v3 = vld [vmem:[%s4090_s8 + $0x10] ss:$8 sps:$4 sm:$0xff]  }
 0x6c6   : > { %v3433_v2 = vmov 0   ;;  %v3121_v4 = vld [vmem:[#allocation10 + $0x10] ss:$8 sps:$4 sm:$0xff]  }
 0x6c7   : > { %v1820_v8 = vrot.slane %v1813_v28, %v3844_v34  ;;  %v1828_v9 = vrot.slane %v2669_v5, %v3844_v34  ;;  %v1836_v10 = vrot.slane %v1829_v32, %v3844_v34  ;;  %v1844_v11 = vrot.slane %v2670_v6, %v3844_v34  ;;  %2121 = vmatpush1.bf16.msra.mxu1 %v3100_v54  ;;  %v3126_v28 = vld [vmem:[%s4090_s8 + $0x4] ss:$8 sps:$4 sm:$0xff]   ;;  %v3124_v32 = vld [vmem:[%s4090_s8] ss:$8 sps:$4 sm:$0xff]  }
 0x6c8   : > { %2122 = vmatprep.subr.bf16.mxu1 %v3108_v56  ;;  %2146 = vmatprep.mubr.bf16.mxu1 %v3433_v2  ;;  %v3129_v5 = vld [vmem:[#allocation10 + $0x4] ss:$8 sps:$4 sm:$0xff]   ;;  %v3127_v6 = vld [vmem:[#allocation10] ss:$8 sps:$4 sm:$0xff]  }
 0x6c9   : > { %v1846_v12 = vcombine.high %v1820_v8, %v1828_v9  ;;  %v1862_v13 = vcombine.high %v1836_v10, %v1844_v11  ;;  %v1845_v14 = vcombine.low %v1820_v8, %v1828_v9  ;;  %v1861_v15 = vcombine.low %v1836_v10, %v1844_v11  ;;  %v2679_v11 = vld [vmem:[%s4094_s12] ss:$0 sm:$0xff] }
 0x6cb   : > { %v1860_v0 = vrot.slane %v1846_v12, %v3849_v38  ;;  %v1876_v16 = vrot.slane %v1862_v13, %v3849_v38  ;;  %v1853_v17 = vrot.slane %v1845_v14, %v3849_v38  ;;  %v1869_v18 = vrot.slane %v1861_v15, %v3849_v38  ;;  %2123 = vmatpush1.bf16.msra.mxu1 %v3106_v57  ;;  %v3130_v15 = vld [vmem:[#allocation11 + $0x78] sm:$0xff]  }
 0x6cc   : > { %2124 = vmatprep.subr.bf16.mxu1 %v3114_v59 }
 0x6cd   : > { %v1879_v19 = vcombine.low %v1860_v0, %v1876_v16  ;;  %v1878_v20 = vcombine.high %v1853_v17, %v1869_v18  ;;  %v1877_v21 = vcombine.low %v1853_v17, %v1869_v18  ;;  %v1880_v34 = vcombine.high %v1860_v0, %v1876_v16  ;;  %v3131_v0 = vld [vmem:[#allocation11 + $0x38] sm:$0xff]   ;;  %v3132_v16 = vld [vmem:[#allocation11 + $0x70] sm:$0xff]   ;;  %v3134_v18 = vld [vmem:[#allocation11 + $0x68] sm:$0xff]  }
 0x6ce   : > { %v3133_v17 = vld [vmem:[#allocation11 + $0x30] sm:$0xff]  }
 0x6cf   : > { %1886 = vrot.lane.b32.xlu0 %v1879_v19, %s3425_s9  ;;  %1882 = vrot.lane.b32.xlu1 %v1878_v20, %s3423_s24  ;;  %v3135_v19 = vld [vmem:[#allocation11 + $0x28] sm:$0xff]   ;;  %v3136_v20 = vld [vmem:[#allocation11 + $0x60] sm:$0xff]   ;;  %s2731_s9 = sshll.u32 %s3526_s14, 7  ;;  %s3434_s14 = smov [#allocation13]  }
 0x6d0   : > { %2125 = vmatpush1.bf16.msra.mxu1 %v3112_v61  ;;  %s4045_s16 = scalar_lea.hbm %s4095_s13, %s2731_s9 }
 0x6d1   : > { %2126 = vmatprep.subr.bf16.mxu1 %v3120_v63 }
 0x6d3   : > { %1890 = vrot.lane.b32.xlu0 %v1880_v34, %s3426_s15  ;;  %v3138_v34 = vld [vmem:[#allocation11 + $0x58] sm:$0xff]   ;;  %s524_s15 = scalar_lea.vmem [#allocation13], %s2623_s23  ;;  %s3337_s23 = sshll.u32 %s3434_s14, 4  ;;  %s3338_s23 = int_to_ptr.vmem [resolvable:$false] %s3337_s23 }
 0x6d4   : > { %2127 = vmatpush1.bf16.msra.mxu1 %v3118_v3  ;;  %s2494_s20 = sshll.u32 %s524_s15, 4  ;;  %s3339_s22 = scalar_lea.vmem %s3338_s23, 256  ;;  %s2495_s20 = int_to_ptr.vmem [resolvable:$true] %s2494_s20 }
 0x6d5   : > { %2128 = vmatprep.subr.bf16.mxu1 %v3126_v28  ;;  %s3333_s19 = scalar_lea.vmem %s2495_s20, 128  ;;  %p3340_p2 = scmp.lt.s32.totalorder %s2495_s20, %s3338_s23 }
 0x6d6   : > { %p3334_p8 = scmp.ne.s32.totalorder %s2495_s20, %s3333_s19  ;;  %p3341_p9 = scmp.lt.s32.totalorder %s3339_s22, %s3333_s19 }
 0x6d8   : > { %2129 = vmatpush1.bf16.msra.mxu1 %v3124_v32  ;;  %p3335_p13 = pnand %p3334_p8, %p4135_p10  ;;  %p3342_p11 = por %p3341_p9, %p3340_p2 }
 0x6d9   : > { %2786 = vmatprep.subr.bf16.mxu1 %v3130_v15 }
 0x6da   : > { %p3336_p0 = pneg %p3335_p13 }
 0x6dc   : > { %p3343_p1 = pnand %p3342_p11, %p3336_p0 }
 0x741   : > { %v1887_v22 = vpop.permute.xlu0 %1886  ;;  %v1883_v23 = vpop.permute.xlu1 %1882 }
 0x742   : > { %v1893_v24 = vsel %vm870_vm1, %v1877_v21, %v1883_v23  ;;  %v3137_v21 = vld [vmem:[#allocation11 + $0x20] sm:$0xff]   ;;  %v3140_v23 = vld [vmem:[#allocation11 + $0x50] sm:$0xff]  }
 0x743   : > { %v1894_v26 = vsel %vm872_vm3, %v1893_v24, %v1887_v22  ;;  %v3139_v22 = vld [vmem:[#allocation11 + $0x18] sm:$0xff]   ;;  %v3141_v24 = vld [vmem:[#allocation11 + $0x10] sm:$0xff]  }
 0x745   : > { %v1891_v25 = vpop.permute.xlu0 %1890 }
 0x746   : > { %v1895_v27 = vsel %vm874_vm4, %v1894_v26, %v1891_v25  ;;  %v3142_v25 = vld [vmem:[#allocation11 + $0x48] sm:$0xff]  }
 0x747   : > { %v1896_v38 = vpack.c.bf16 %v1895_v27, %v1895_v27  ;;  %v3143_v26 = vld [vmem:[#allocation11 + $0x8] sm:$0xff]   ;;  %v3144_v27 = vld [vmem:[#allocation11 + $0x40] sm:$0xff]  }
 0x749   : > { %2933 = vmatmul.mubr.bf16.vlgmr.msra.gmra.mxu0 %v1896_v38  ;;  %v3145_v38 = vld [vmem:[#allocation11] sm:$0xff]  }
 0x74a   : > { %2252 = vmatpush1.bf16.msra.mxu0 %v3085_v31  ;;  %2283 = vmatprep.mubr.bf16.mxu0 %v3433_v2 }
 0x74b   : > { %2253 = vmatprep.subr.bf16.mxu0 %v3093_v36 }
 0x74e   : > { %2254 = vmatpush1.bf16.msra.mxu0 %v3091_v39 }
 0x74f   : > { %2255 = vmatprep.subr.bf16.mxu0 %v3099_v49 }
 0x752   : > { %2256 = vmatpush1.bf16.msra.mxu0 %v3097_v51 }
 0x753   : > { %2257 = vmatprep.subr.bf16.mxu0 %v3105_v53 }
 0x756   : > { %2258 = vmatpush1.bf16.msra.mxu0 %v3103_v55 }
 0x757   : > { %2259 = vmatprep.subr.bf16.mxu0 %v3111_v47 }
 0x75a   : > { %2260 = vmatpush1.bf16.msra.mxu0 %v3109_v58 }
 0x75b   : > { %2261 = vmatprep.subr.bf16.mxu0 %v3117_v60 }
 0x75e   : > { %2262 = vmatpush1.bf16.msra.mxu0 %v3115_v62 }
 0x75f   : > { %2263 = vmatprep.subr.bf16.mxu0 %v3123_v1 }
 0x762   : > { %2264 = vmatpush1.bf16.msra.mxu0 %v3121_v4 }
 0x763   : > { %2265 = vmatprep.subr.bf16.mxu0 %v3129_v5 }
 0x766   : > { %2266 = vmatpush1.bf16.msra.mxu0 %v3127_v6 }
 0x809   : > { %v1995_v40 = vpop.f32.mrf.mxu0 }
 0x80a   : > { %v3994_v42 = vadd.f32 %v3174_v41, %v1995_v40 }
 0x80b   : > { %v2934_v43 = vpop.f32.mrf.mxu0 }
 0x80c   : > { %v2002_v44 = vmul.f32 %v3994_v42, %v3994_v42 }
 0x80d   : > { %v1998_v45 = vpop.f32.mrf.mxu0 }
 0x80e   : > { %2003 = vadd.xlane.f32.xlu1 %v2002_v44 }
 0x80f   : > { %v2935_v46 = vpop.f32.mrf.mxu0 }
 0x897   : > { %v2004_v7 = vpop.xlane.xlu1 %2003 }
 0x898   : > { %v2005_v8 = vmul.f32 0.0078125, %v2004_v7 }
 0x89a   : > { %v2006_v9 = vadd.f32 1e-05, %v2005_v8 }
 0x89c   : > { %3164 = vrsqrt.f32 %v2006_v9 }
 0x8a9   : > { %v3165_v10 = vpop.eup %3164 }
 0x8aa   : > { %v2008_v12 = vmul.f32 %v3165_v10, %v3994_v42 }
 0x8ac   : > { %v2016_v13 = vmul.f32 %v2679_v11, %v2008_v12 }
 0x8ae   : > { %v2017_v14 = vpack.c.bf16 %v2016_v13, %v2016_v13 }
 0x8b0   : > { %2147 = vmatmul.mubr.bf16.vlgmr.msra.gmra.mxu1 %v2017_v14  ;;  %2284 = vmatmul.mubr.bf16.vlgmr.msra.gmra.mxu0 %v2017_v14 }
 0x8b1   : > { %2787 = vmatpush3.bf16.msra.mxu1 %v3131_v0 }
 0x8b2   : > { %2788 = vmatprep.subr.bf16.mxu1 %v3132_v16 }
 0x8b5   : > { %2789 = vmatpush3.bf16.msra.mxu1 %v3133_v17 }
 0x8b6   : > { %2790 = vmatprep.subr.bf16.mxu1 %v3134_v18 }
 0x8b9   : > { %2791 = vmatpush3.bf16.msra.mxu1 %v3135_v19 }
 0x8ba   : > { %2792 = vmatprep.subr.bf16.mxu1 %v3136_v20 }
 0x8bd   : > { %2793 = vmatpush3.bf16.msra.mxu1 %v3137_v21 }
 0x8be   : > { %2794 = vmatprep.subr.bf16.mxu1 %v3138_v34 }
 0x8c1   : > { %2795 = vmatpush3.bf16.msra.mxu1 %v3139_v22 }
 0x8c2   : > { %2796 = vmatprep.subr.bf16.mxu1 %v3140_v23 }
 0x8c5   : > { %2797 = vmatpush3.bf16.msra.mxu1 %v3141_v24 }
 0x8c6   : > { %2798 = vmatprep.subr.bf16.mxu1 %v3142_v25 }
 0x8c9   : > { %2799 = vmatpush3.bf16.msra.mxu1 %v3143_v26 }
 0x8ca   : > { %2800 = vmatprep.subr.bf16.mxu1 %v3144_v27 }
 0x8cd   : > { %2801 = vmatpush3.bf16.msra.mxu1 %v3145_v38 }
 0x970   : > { %v2148_v29 = vpop.f32.mrf.mxu1  ;;  %v2285_v30 = vpop.f32.mrf.mxu0 }
 0x971   : > { %v2712_v31 = vmul.f32 -1.442695, %v2148_v29 }
 0x972   : > { %v2150_v33 = vpop.f32.mrf.mxu1  ;;  %v2287_v35 = vpop.f32.mrf.mxu0 }
 0x973   : > { %3166 = vpow2.f32 %v2712_v31  ;;  %v2713_v36 = vmul.f32 -1.442695, %v2150_v33 }
 0x974   : > { %v2152_v37 = vpop.f32.mrf.mxu1  ;;  %v2289_v39 = vpop.f32.mrf.mxu0 }
 0x975   : > { %3168 = vpow2.f32 %v2713_v36 }
 0x976   : > { %v2153_v40 = vpop.f32.mrf.mxu1  ;;  %v2290_v41 = vpop.f32.mrf.mxu0 }
 0x980   : > { %v3167_v43 = vpop.eup %3166 }
 0x981   : > { %v2298_v44 = vadd.f32 1.0, %v3167_v43 }
 0x982   : > { %v3169_v45 = vpop.eup %3168 }
 0x983   : > { %3170 = vrcp.f32 %v2298_v44  ;;  %v2299_v46 = vadd.f32 1.0, %v3169_v45 }
 0x985   : > { %3172 = vrcp.f32 %v2299_v46 }
 0x990   : > { %v3171_v48 = vpop.eup %3170 }
 0x991   : > { %v2304_v49 = vmul.f32 %v3171_v48, %v2148_v29 }
 0x992   : > { %v3173_v50 = vpop.eup %3172 }
 0x993   : > { %v2305_v51 = vmul.f32 %v3173_v50, %v2150_v33  ;;  %v2306_v52 = vmul.f32 %v2304_v49, %v2285_v30 }
 0x995   : > { %v2307_v53 = vmul.f32 %v2305_v51, %v2287_v35  ;;  %v2308_v55 = vpack.c.bf16 %v2306_v52, %v2306_v52 }
 0x997   : > { %v2309_v54 = vpack.c.bf16 %v2307_v53, %v2307_v53 }
 0x999   : > { %2470 = vmatprep.mubr.bf16.mxu1 %v2309_v54 }
 0x99a   : > { %2471 = vmatmul.mubr.bf16.vlgmr.msra.gmra.mxu1 %v2308_v55 }
 0xa5a   : > { %v2802_v56 = vpop.f32.mrf.mxu1 }
 0xa5c   : > { %v2803_v47 = vpop.f32.mrf.mxu1 }
 0xa5d   : > { %v2804_v57 = vadd.f32 %v2803_v47, %v2802_v56 }
 0xa5e   : > { %v2805_v58 = vpop.f32.mrf.mxu1 }
 0xa5f   : > { %v2478_v59 = vadd.f32 %v2804_v57, %v3994_v42 }
 0xa60   : > { %v2806_v60 = vpop.f32.mrf.mxu1 }
 0xa61   : > { %2479 = vst [vmem:[%s524_s15] sm:$0xff] %v2478_v59 }
 0xa62   : > { %3346 = shalt.err (!%p3343_p1)
}
 0xa63   : > { %s3347_s3 = scalar_lea.hbm %s4045_s16, 128  ;;  %s3351_s24 = scalar_lea.hbm %s4095_s13, 256 }
 0xa64   : > { %p3348_p3 = scmp.ne.s32.totalorder %s4045_s16, %s3347_s3  ;;  %p3352_p6 = scmp.lt.s32.totalorder %s4045_s16, %s4095_s13 }
 0xa65   : > { %p3353_p5 = scmp.lt.s32.totalorder %s3351_s24, %s3347_s3 }
 0xa66   : > { %p3349_p4 = pnand %p3348_p3, %p4135_p10 }
 0xa67   : > { %p3354_p7 = por %p3353_p5, %p3352_p6 }
 0xa68   : > { %p3350_p12 = pneg %p3349_p4 }
 0xa6a   : > { %p3355_p8 = pnand %p3354_p7, %p3350_p12 }
 0xa6c   : > { %3358 = shalt.err (!%p3355_p8)
}
 0xa6d   : > { %2958 = dma.vmem_to_hbm [thread:$0]  (%p4135_p10), %s2495_s20, 128, %s4045_s16, %s2481_s21  }
 0xa6e PF: > { %s2506_s9 = sand.u32 1, %s3397_s25   ;;  %p4136_p13 = scmp.ne.s32.totalorder %s4125_s17, 0 }
 0xa6f   : > { %p4137_p0 = scmp.ge.s32.totalorder %s3409_s28, 2  ;;  %s2507_s15 = scalar_lea.sflag [#allocation4], %s2506_s9 }
 0xa71   : > { %p2981_p2 = pnand %p4137_p0, %p4136_p13 }
 0xa73   : > { %p2982_p9 = pneg %p2981_p2 }
 0xa75   : > { %3392 = dma.done.wait (%p2982_p9), %s2507_s15, 128  }
 0xa76   : > { %3394 = vsyncadd (%p2982_p9), %s2507_s15, 4294967168  ;;  %s4138_s28 = sld [smem:[#allocation20_spill]]  ;;  %s4141_s25 = smov %s3401_s26 }
 0xa77   : > { %s4139_s30 = sld [smem:[#allocation19_spill]] }
 0xa78   : > { %s4140_s27 = sld [smem:[#allocation21_spill]] }
 0xa7c   : > { %p29_p11 = scmp.ge.s32.totalorder %s4138_s28, 4  }
 0xa7d   : > { %s4142_s26 = smov %s4139_s30 }
 0xa7e   :  { %31 = sbr.rel (!%p29_p11) target bundleno = 14 (0xe), region = 137 }
 0xa83   :  { %2512 = vsyncpa [#allocation3], 1 }
 0xa84   :  { %2514 = vsyncpa [#allocation3 + $0x1], 1 }
 0xa85   :  { %2515 = vsyncpa [#allocation6], 1 }
 0xa86   :  { %2516 = vsyncpa [#allocation9], 1 }
 0xa87   :  { %2517 = vsyncpa [#allocation12], 1 }
 0xa88   :  { %2518 = vsyncpa [#allocation4], 1 }
 0xa89   :  { %2520 = vsyncpa [#allocation4 + $0x1], 1 }

</bundles_post_ra>
